<compile_context>
chip_gen: v6e
topology: v6e:2x2x1
jax: 0.10.0
libtpu: 0.0.40
codegen_flags: <defaults>
</compile_context>

<pallas_src>
import functools
import math

import jax
import jax.numpy as jnp
from jax import lax
from jax.experimental import pallas as pl
from jax.experimental.pallas import tpu as pltpu


def _round_up(x, m):
    return ((x + m - 1) // m) * m


def _pad2(rows, cols, itemsize):
    """VMEM bytes of a 2-D tile after (8, 128) sublane/lane padding."""
    return _round_up(max(rows, 1), 8) * _round_up(max(cols, 1), 128) * itemsize


def _layernorm(z, gamma, beta, eps=1e-5):
    # Single-pass LayerNorm (biased variance, like PyTorch nn.LayerNorm):
    # var = E[z^2] - E[z]^2 halves the cross-lane reductions / VPU passes.
    mu = jnp.mean(z, axis=-1, keepdims=True)
    var = jnp.maximum(jnp.mean(z * z, axis=-1, keepdims=True) - mu * mu, 0.0)
    return (z - mu) * lax.rsqrt(var + eps) * gamma + beta


def _encoder_layer_kernel(nhead, head_chunk, compute_dtype, approx_recip,
                          x_ref,
                          wq_ref, bq_ref, wk_ref, bk_ref, wv_ref, bv_ref,
                          wo_ref, bo_ref,
                          w1_ref, b1_ref, w2_ref, b2_ref,
                          gamma_ref, beta_ref,
                          o_ref,
                          qh_ref, kh_ref, vh_ref, y1_ref, acc_ref):
    f = pl.program_id(1)
    n_f = pl.num_programs(1)
    cd = compute_dtype

    seq = x_ref.shape[1]
    d_model = x_ref.shape[2]
    d_head = d_model // nhead
    n_chunks = nhead // head_chunk

    gamma = gamma_ref[...].astype(jnp.float32)   # (1, D)
    beta = beta_ref[...].astype(jnp.float32)     # (1, D)

    # ---------------- Phase 1 (f == 0): self-attention + Add&Norm #1 --------
    @pl.when(f == 0)
    def _attention():
        x32 = x_ref[0].astype(jnp.float32)       # residual path stays f32
        xc = x_ref[0].astype(cd)                 # MXU operand (bf16 by default)

        # Full-width projections (D-wide N keeps the MXU fed).
        # 1/sqrt(d_head) is already folded into Wq / bq by the wrapper.
        q = jnp.dot(xc, wq_ref[...], preferred_element_type=jnp.float32) + bq_ref[...]
        k = jnp.dot(xc, wk_ref[...], preferred_element_type=jnp.float32) + bk_ref[...]
        v = jnp.dot(xc, wv_ref[...], preferred_element_type=jnp.float32) + bv_ref[...]

        # One-time relayout (S, H*Dh) -> heads-leading (H, S, Dh) scratches so
        # the chunked attention below only does cheap leading-dim slices.
        # TODO(synk): when d_head < 128 these stores are lane-masked; a
        #             pltpu.einshape-based relayout could remove that cost.
        for h in range(nhead):
            lo = h * d_head
            qh_ref[h] = q[:, lo:lo + d_head].astype(cd)
            kh_ref[h] = k[:, lo:lo + d_head].astype(cd)
            vh_ref[h] = v[:, lo:lo + d_head].astype(cd)

        def head_chunk_step(c, attn_acc):
            # Process `head_chunk` heads at a time so the (Hc, S, S) softmax
            # temporaries stay bounded in VMEM.
            h0 = c * head_chunk
            if not isinstance(h0, int):
                h0 = pl.multiple_of(h0, head_chunk)
            qc = qh_ref[pl.ds(h0, head_chunk)]                       # (Hc, S, Dh)
            kc = kh_ref[pl.ds(h0, head_chunk)]
            vc = vh_ref[pl.ds(h0, head_chunk)]
            woc = wo_ref[pl.ds(h0, head_chunk)]                      # (Hc, Dh, D)

            s = jnp.einsum('hqe,hke->hqk', qc, kc,
                           preferred_element_type=jnp.float32)       # (Hc, S, S)
            s = s - jnp.max(s, axis=-1, keepdims=True)
            p = jnp.exp(s)
            denom = jnp.sum(p, axis=-1, keepdims=True)
            if approx_recip:
                p = p * pl.reciprocal(denom, approx=True)            # EUP slot
            else:
                p = p / denom                                        # exact (f32)
            ctx = jnp.einsum('hqk,hke->hqe', p.astype(cd), vc,
                             preferred_element_type=jnp.float32)     # (Hc, S, Dh)
            # Per-head output projection, summed over the chunk's heads:
            # replaces the old (S, D) concat scratch + single Wo matmul.
            attn_h = jnp.einsum('hse,hed->hsd', ctx.astype(cd), woc,
                                preferred_element_type=jnp.float32)  # (Hc, S, D)
            return attn_acc + jnp.sum(attn_h, axis=0)

        attn0 = jnp.zeros((seq, d_model), jnp.float32)
        if n_chunks == 1:
            attn = head_chunk_step(0, attn0)
        else:
            attn = lax.fori_loop(0, n_chunks, head_chunk_step, attn0)
        attn = attn + bo_ref[...]

        # Add & Norm #1 (eval mode: dropout == identity).
        y1_ref[...] = _layernorm(attn + x32, gamma, beta)
        acc_ref[...] = jnp.zeros_like(acc_ref)

    # ---------------- Phase 2 (every f): FFN partial over this F block ------
    y1c = y1_ref[...].astype(cd)
    hdn = jnp.dot(y1c, w1_ref[...], preferred_element_type=jnp.float32) \
        + b1_ref[...]                                                 # (S, Fb) f32
    hdn = jnp.maximum(hdn, 0.0)                                       # ReLU
    acc_ref[...] += jnp.dot(hdn.astype(cd), w2_ref[...],
                            preferred_element_type=jnp.float32)       # (S, D) f32

    # ---------------- Phase 3 (last f): bias, Add&Norm #2, write ------------
    @pl.when(f == n_f - 1)
    def _finalize():
        ffn = acc_ref[...] + b2_ref[...]
        # Same gamma/beta for both Add&Norms: the reference module shares one
        # nn.LayerNorm (`self.normalizer`) for both residual connections.
        o_ref[0] = _layernorm(ffn + y1_ref[...], gamma, beta).astype(o_ref.dtype)


def transformer_encoder_layer(x, params, nhead, *, compute_dtype=jnp.bfloat16,
                              f_block=None, head_chunk=None):
    B, S, D = x.shape
    F = params["w1"].shape[1]
    assert D % nhead == 0
    d_head = D // nhead
    cd = jnp.dtype(compute_dtype) if compute_dtype is not None else jnp.dtype(x.dtype)
    cdb = cd.itemsize
    xb = jnp.dtype(x.dtype).itemsize
    approx_recip = cd != jnp.dtype(jnp.float32)

    # ---- chip-aware VMEM cap (128 MiB on v5e/v6e, 64 MiB on v7x) ----
    try:
        chip_vmem = int(pltpu.get_tpu_info().vmem_capacity_bytes)
    except Exception:
        chip_vmem = 64 << 20          # conservative fallback (v7x-sized)
    cap = int(chip_vmem * 0.9)

    # ---- head chunking: bound the (Hc, S, S) softmax temporaries ----
    if head_chunk is None:
        per_head = _pad2(S, S, 4) + _pad2(S, S, cdb) + _pad2(S, D, 4)
        head_chunk = max(1, min(nhead, (8 << 20) // max(per_head, 1)))
        while nhead % head_chunk:
            head_chunk -= 1
    assert nhead % head_chunk == 0

    # ---- honest VMEM budget (padded tiles + scratches + compiler temps) ----
    def budget(fb):
        w_bufs = 1 if fb == F else 2
        blocks = (
            4 * _pad2(S, D, xb)                                # x + out, 2 bufs each
            + 3 * _pad2(D, D, cdb)                             # Wq/Wk/Wv (1 buf)
            + nhead * _pad2(d_head, D, cdb)                    # Wo heads (1 buf)
            + 7 * _pad2(1, D, 4)                               # biases, gamma, beta
            + w_bufs * (_pad2(D, fb, cdb) + _pad2(fb, D, cdb) + _pad2(1, fb, 4))
        )
        scratch = 3 * nhead * _pad2(S, d_head, cdb) + 2 * _pad2(S, D, 4)
        attn_tmp = (3 * _pad2(S, D, 4)                          # q/k/v f32
                    + head_chunk * (_pad2(S, S, 4) + _pad2(S, S, cdb)
                                    + _pad2(S, d_head, 4 + cdb)
                                    + _pad2(S, D, 4))
                    + 2 * _pad2(S, D, 4))
        ffn_tmp = _pad2(S, fb, 4 + cdb) + 2 * _pad2(S, D, 4)
        return blocks + scratch + attn_tmp + ffn_tmp + (4 << 20)   # + headroom

    # ---- FFN hidden-dim tiling: prefer f_block == F (weights DMA'd once) ----
    if f_block is None:
        cands = [F] + [c for c in (4096, 2048, 1024, 512, 256, 128)
                       if c < F and F % c == 0]
        f_block = cands[-1]
        for c in cands:
            if budget(c) <= cap:
                f_block = c
                break
    assert F % f_block == 0 and (f_block == F or f_block % 128 == 0)
    n_f = F // f_block
    vmem_limit = int(min(max(budget(f_block), 16 << 20), cap))

    # Fold the 1/sqrt(d_head) attention scale into Wq/bq (exact identity).
    scale = 1.0 / math.sqrt(d_head)
    wq = params["wq"] * scale
    bq = params["bq"].reshape(1, D).astype(jnp.float32) * scale
    wo_heads = params["wo"].reshape(nhead, d_head, D)       # per-head output proj

    w = lambda a: a.astype(cd)                               # MXU operands
    asf32 = lambda a: a.reshape(1, -1).astype(jnp.float32)   # biases / norm params

    inputs = (
        x,
        w(wq), bq,
        w(params["wk"]), asf32(params["bk"]),
        w(params["wv"]), asf32(params["bv"]),
        w(wo_heads), asf32(params["bo"]),
        w(params["w1"]), asf32(params["b1"]),
        w(params["w2"]), asf32(params["b2"]),
        asf32(params["gamma"]), asf32(params["beta"]),
    )

    scratch_shapes = [
        pltpu.VMEM((nhead, S, d_head), cd),   # Q heads
        pltpu.VMEM((nhead, S, d_head), cd),   # K heads
        pltpu.VMEM((nhead, S, d_head), cd),   # V heads
        pltpu.VMEM((S, D), jnp.float32),      # y1 (post Add&Norm #1)
        pltpu.VMEM((S, D), jnp.float32),      # FFN accumulator
    ]

    kernel = functools.partial(_encoder_layer_kernel, nhead, head_chunk, cd,
                               approx_recip)
    single_w = (n_f == 1)

    def build_and_run(use_single_buffer):
        def spec(shape, index_map, single):
            if single and use_single_buffer:
                return pl.BlockSpec(shape, index_map, pipeline_mode=pl.Buffered(1))
            return pl.BlockSpec(shape, index_map)

        def const_spec(shape):
            zeros = (0,) * len(shape)
            return spec(shape, lambda b, f, _z=zeros: _z, True)

        in_specs = [
            pl.BlockSpec((1, S, D), lambda b, f: (b, 0, 0)),       # x
            const_spec((D, D)), const_spec((1, D)),                # Wq, bq
            const_spec((D, D)), const_spec((1, D)),                # Wk, bk
            const_spec((D, D)), const_spec((1, D)),                # Wv, bv
            const_spec((nhead, d_head, D)), const_spec((1, D)),    # Wo(heads), bo
            spec((D, f_block), lambda b, f: (0, f), single_w),     # W1 block
            spec((1, f_block), lambda b, f: (0, f), single_w),     # b1 block
            spec((f_block, D), lambda b, f: (f, 0), single_w),     # W2 block
            const_spec((1, D)),                                    # b2
            const_spec((1, D)), const_spec((1, D)),                # gamma, beta
        ]

        return pl.pallas_call(
            kernel,
            out_shape=jax.ShapeDtypeStruct((B, S, D), x.dtype),
            grid=(B, n_f),
            in_specs=in_specs,
            out_specs=pl.BlockSpec((1, S, D), lambda b, f: (b, 0, 0)),
            scratch_shapes=scratch_shapes,
            compiler_params=pltpu.CompilerParams(
                dimension_semantics=("parallel", "arbitrary"),
                vmem_limit_bytes=vmem_limit),
        )(*inputs)

    if not hasattr(pl, "Buffered"):
        return build_and_run(False)
    try:
        return build_and_run(True)
    except Exception:
        # Fallback for JAX versions without per-spec single buffering.
        return build_and_run(False)


def init_params(key, d_model, nhead, dim_feedforward):
    keys = jax.random.split(key, 6)
    s = 0.02
    return {
        "wq": s * jax.random.normal(keys[0], (d_model, d_model), jnp.float32),
        "wk": s * jax.random.normal(keys[1], (d_model, d_model), jnp.float32),
        "wv": s * jax.random.normal(keys[2], (d_model, d_model), jnp.float32),
        "wo": s * jax.random.normal(keys[3], (d_model, d_model), jnp.float32),
        "w1": s * jax.random.normal(keys[4], (d_model, dim_feedforward), jnp.float32),
        "w2": s * jax.random.normal(keys[5], (dim_feedforward, d_model), jnp.float32),
        "bq": jnp.zeros((1, d_model), jnp.float32),
        "bk": jnp.zeros((1, d_model), jnp.float32),
        "bv": jnp.zeros((1, d_model), jnp.float32),
        "bo": jnp.zeros((1, d_model), jnp.float32),
        "b1": jnp.zeros((1, dim_feedforward), jnp.float32),
        "b2": jnp.zeros((1, d_model), jnp.float32),
        "gamma": jnp.ones((1, d_model), jnp.float32),
        "beta": jnp.zeros((1, d_model), jnp.float32),
    }


def _reference(x, params, nhead):
    # Pure-JAX reference of the PyTorch forward (eval mode).
    B, S, D = x.shape
    dh = D // nhead

    def ln(z):
        mu = z.mean(-1, keepdims=True)
        var = ((z - mu) ** 2).mean(-1, keepdims=True)
        return (z - mu) / jnp.sqrt(var + 1e-5) * params["gamma"] + params["beta"]

    q = (x @ params["wq"] + params["bq"]).reshape(B, S, nhead, dh).transpose(0, 2, 1, 3)
    k = (x @ params["wk"] + params["bk"]).reshape(B, S, nhead, dh).transpose(0, 2, 1, 3)
    v = (x @ params["wv"] + params["bv"]).reshape(B, S, nhead, dh).transpose(0, 2, 1, 3)
    s = jnp.einsum("bhqd,bhkd->bhqk", q, k) / math.sqrt(dh)
    p = jax.nn.softmax(s, axis=-1)
    ctx = jnp.einsum("bhqk,bhkd->bhqd", p, v).transpose(0, 2, 1, 3).reshape(B, S, D)
    attn = ctx @ params["wo"] + params["bo"]
    y1 = ln(attn + x)
    ffn = jnp.maximum(y1 @ params["w1"] + params["b1"], 0.0) @ params["w2"] + params["b2"]
    return ln(ffn + y1)


if __name__ == "__main__":
    # Small smoke-test shapes (real benchmarking should use D, d_head >= 128).
    B, S, D, H, F = 2, 8, 32, 4, 256
    key = jax.random.PRNGKey(0)
    kx, kp = jax.random.split(key)
    x = jax.random.normal(kx, (B, S, D), jnp.float32)
    params = init_params(kp, D, H, F)
    ref = _reference(x, params, H)

    # Default bf16 MXU operands; f_block=128 and head_chunk=2 exercise the
    # F-tiled accumulation and the fori_loop head-chunked attention paths.
    out = transformer_encoder_layer(x, params, H, f_block=128, head_chunk=2)
    out = jax.block_until_ready(out)
    assert out.shape == (B, S, D) and out.dtype == x.dtype
    assert jnp.allclose(out, ref, atol=2e-2, rtol=2e-2), "bf16 path mismatch"

    # f32 compute (exact softmax reciprocal), auto f_block (== F here) for
    # tight parity with the reference and the single-buffered-FFN-weights path.
    out_f32 = transformer_encoder_layer(x, params, H, compute_dtype=jnp.float32)
    out_f32 = jax.block_until_ready(out_f32)
    assert jnp.allclose(out_f32, ref, atol=5e-4, rtol=5e-4), "f32 path mismatch"

    print("KERNEL_OK")
</pallas_src>

<mosaic_0001>
module attributes {stable_mosaic.version = 11 : i64} {
  func.func @_encoder_layer_kernel(%arg0: i32, %arg1: i32, %arg2: memref<1x8x32xf32, #tpu.memory_space<vmem>>, %arg3: memref<32x32xbf16, #tpu.memory_space<vmem>>, %arg4: memref<1x32xf32, #tpu.memory_space<vmem>>, %arg5: memref<32x32xbf16, #tpu.memory_space<vmem>>, %arg6: memref<1x32xf32, #tpu.memory_space<vmem>>, %arg7: memref<32x32xbf16, #tpu.memory_space<vmem>>, %arg8: memref<1x32xf32, #tpu.memory_space<vmem>>, %arg9: memref<4x8x32xbf16, #tpu.memory_space<vmem>>, %arg10: memref<1x32xf32, #tpu.memory_space<vmem>>, %arg11: memref<32x128xbf16, #tpu.memory_space<vmem>>, %arg12: memref<1x128xf32, #tpu.memory_space<vmem>>, %arg13: memref<128x32xbf16, #tpu.memory_space<vmem>>, %arg14: memref<1x32xf32, #tpu.memory_space<vmem>>, %arg15: memref<1x32xf32, #tpu.memory_space<vmem>>, %arg16: memref<1x32xf32, #tpu.memory_space<vmem>>, %arg17: memref<1x8x32xf32, #tpu.memory_space<vmem>>, %arg18: memref<4x8x8xbf16, #tpu.memory_space<vmem>>, %arg19: memref<4x8x8xbf16, #tpu.memory_space<vmem>>, %arg20: memref<4x8x8xbf16, #tpu.memory_space<vmem>>, %arg21: memref<8x32xf32, #tpu.memory_space<vmem>>, %arg22: memref<8x32xf32, #tpu.memory_space<vmem>>) attributes {dimension_semantics = [#tpu.dimension_semantics<parallel>, #tpu.dimension_semantics<arbitrary>], iteration_bounds = array<i64: 2, 2>, scalar_prefetch = 0 : i64, scratch_operands = 5 : i64, tpu.core_type = #tpu.core_type<tc>, window_params = [{transform_indices = @transform_0, window_bounds = array<i64: 1, 8, 32>}, {pipeline_mode = #tpu.pipeline_mode<synchronous>, transform_indices = @transform_1, window_bounds = array<i64: 32, 32>}, {pipeline_mode = #tpu.pipeline_mode<synchronous>, transform_indices = @transform_2, window_bounds = array<i64: 1, 32>}, {pipeline_mode = #tpu.pipeline_mode<synchronous>, transform_indices = @transform_3, window_bounds = array<i64: 32, 32>}, {pipeline_mode = #tpu.pipeline_mode<synchronous>, transform_indices = @transform_4, window_bounds = array<i64: 1, 32>}, {pipeline_mode = #tpu.pipeline_mode<synchronous>, transform_indices = @transform_5, window_bounds = array<i64: 32, 32>}, {pipeline_mode = #tpu.pipeline_mode<synchronous>, transform_indices = @transform_6, window_bounds = array<i64: 1, 32>}, {pipeline_mode = #tpu.pipeline_mode<synchronous>, transform_indices = @transform_7, window_bounds = array<i64: 4, 8, 32>}, {pipeline_mode = #tpu.pipeline_mode<synchronous>, transform_indices = @transform_8, window_bounds = array<i64: 1, 32>}, {transform_indices = @transform_9, window_bounds = array<i64: 32, 128>}, {transform_indices = @transform_10, window_bounds = array<i64: 1, 128>}, {transform_indices = @transform_11, window_bounds = array<i64: 128, 32>}, {pipeline_mode = #tpu.pipeline_mode<synchronous>, transform_indices = @transform_12, window_bounds = array<i64: 1, 32>}, {pipeline_mode = #tpu.pipeline_mode<synchronous>, transform_indices = @transform_13, window_bounds = array<i64: 1, 32>}, {pipeline_mode = #tpu.pipeline_mode<synchronous>, transform_indices = @transform_14, window_bounds = array<i64: 1, 32>}, {transform_indices = @transform_15, window_bounds = array<i64: 1, 8, 32>}]} {
    %c0 = arith.constant 0 : index
    %c0_0 = arith.constant 0 : index
    %0 = vector.load %arg15[%c0, %c0_0] : memref<1x32xf32, #tpu.memory_space<vmem>>, vector<1x32xf32>
    %c0_1 = arith.constant 0 : index
    %c0_2 = arith.constant 0 : index
    %1 = vector.load %arg16[%c0_1, %c0_2] : memref<1x32xf32, #tpu.memory_space<vmem>>, vector<1x32xf32>
    %c0_i32 = arith.constant 0 : i32
    %2 = arith.cmpi eq, %arg1, %c0_i32 : i32
    %3 = arith.extui %2 : i1 to i32
    %c0_i32_3 = arith.constant 0 : i32
    %4 = arith.cmpi ne, %3, %c0_i32_3 : i32
    scf.if %4 {
      %c0_19 = arith.constant 0 : index
      %c0_20 = arith.constant 0 : index
      %c0_21 = arith.constant 0 : index
      %23 = vector.load %arg2[%c0_19, %c0_20, %c0_21] : memref<1x8x32xf32, #tpu.memory_space<vmem>>, vector<1x8x32xf32>
      %24 = vector.shape_cast %23 : vector<1x8x32xf32> to vector<8x32xf32>
      %c0_22 = arith.constant 0 : index
      %c0_23 = arith.constant 0 : index
      %c0_24 = arith.constant 0 : index
      %25 = vector.load %arg2[%c0_22, %c0_23, %c0_24] : memref<1x8x32xf32, #tpu.memory_space<vmem>>, vector<1x8x32xf32>
      %26 = vector.shape_cast %25 : vector<1x8x32xf32> to vector<8x32xf32>
      %27 = arith.truncf %26 : vector<8x32xf32> to vector<8x32xbf16>
      %c0_25 = arith.constant 0 : index
      %c0_26 = arith.constant 0 : index
      %28 = vector.load %arg3[%c0_25, %c0_26] : memref<32x32xbf16, #tpu.memory_space<vmem>>, vector<32x32xbf16>
      %cst_27 = arith.constant dense<0.000000e+00> : vector<8x32xf32>
      %29 = tpu.matmul %27, %28, %cst_27 {dimension_numbers = #tpu.dot_dimension_numbers<[1], [0], [0], [1], [0, 0, 1, 1], [], []>} : vector<8x32xbf16>, vector<32x32xbf16>, vector<8x32xf32> -> vector<8x32xf32>
      %c0_28 = arith.constant 0 : index
      %c0_29 = arith.constant 0 : index
      %30 = vector.load %arg4[%c0_28, %c0_29] : memref<1x32xf32, #tpu.memory_space<vmem>>, vector<1x32xf32>
      %31 = vector.broadcast %30 : vector<1x32xf32> to vector<8x32xf32>
      %32 = arith.addf %29, %31 : vector<8x32xf32>
      %c0_30 = arith.constant 0 : index
      %c0_31 = arith.constant 0 : index
      %33 = vector.load %arg5[%c0_30, %c0_31] : memref<32x32xbf16, #tpu.memory_space<vmem>>, vector<32x32xbf16>
      %cst_32 = arith.constant dense<0.000000e+00> : vector<8x32xf32>
      %34 = tpu.matmul %27, %33, %cst_32 {dimension_numbers = #tpu.dot_dimension_numbers<[1], [0], [0], [1], [0, 0, 1, 1], [], []>} : vector<8x32xbf16>, vector<32x32xbf16>, vector<8x32xf32> -> vector<8x32xf32>
      %c0_33 = arith.constant 0 : index
      %c0_34 = arith.constant 0 : index
      %35 = vector.load %arg6[%c0_33, %c0_34] : memref<1x32xf32, #tpu.memory_space<vmem>>, vector<1x32xf32>
      %36 = vector.broadcast %35 : vector<1x32xf32> to vector<8x32xf32>
      %37 = arith.addf %34, %36 : vector<8x32xf32>
      %c0_35 = arith.constant 0 : index
      %c0_36 = arith.constant 0 : index
      %38 = vector.load %arg7[%c0_35, %c0_36] : memref<32x32xbf16, #tpu.memory_space<vmem>>, vector<32x32xbf16>
      %cst_37 = arith.constant dense<0.000000e+00> : vector<8x32xf32>
      %39 = tpu.matmul %27, %38, %cst_37 {dimension_numbers = #tpu.dot_dimension_numbers<[1], [0], [0], [1], [0, 0, 1, 1], [], []>} : vector<8x32xbf16>, vector<32x32xbf16>, vector<8x32xf32> -> vector<8x32xf32>
      %c0_38 = arith.constant 0 : index
      %c0_39 = arith.constant 0 : index
      %40 = vector.load %arg8[%c0_38, %c0_39] : memref<1x32xf32, #tpu.memory_space<vmem>>, vector<1x32xf32>
      %41 = vector.broadcast %40 : vector<1x32xf32> to vector<8x32xf32>
      %42 = arith.addf %39, %41 : vector<8x32xf32>
      %43 = vector.extract_strided_slice %32 {offsets = [0, 0], sizes = [8, 8], strides = [1, 1]} : vector<8x32xf32> to vector<8x8xf32>
      %44 = arith.truncf %43 : vector<8x8xf32> to vector<8x8xbf16>
      %c0_40 = arith.constant 0 : index
      %c0_41 = arith.constant 0 : index
      %c0_42 = arith.constant 0 : index
      %45 = vector.load %arg18[%c0_40, %c0_41, %c0_42] : memref<4x8x8xbf16, #tpu.memory_space<vmem>>, vector<1x8x8xbf16>
      %46 = vector.shape_cast %45 : vector<1x8x8xbf16> to vector<8x8xbf16>
      %47 = vector.shape_cast %44 : vector<8x8xbf16> to vector<1x8x8xbf16>
      tpu.vector_store %arg18[%c0_40, %c0_41, %c0_42], %47 {strides = array<i32>} : memref<4x8x8xbf16, #tpu.memory_space<vmem>>, vector<1x8x8xbf16>,
      %48 = vector.extract_strided_slice %37 {offsets = [0, 0], sizes = [8, 8], strides = [1, 1]} : vector<8x32xf32> to vector<8x8xf32>
      %49 = arith.truncf %48 : vector<8x8xf32> to vector<8x8xbf16>
      %c0_43 = arith.constant 0 : index
      %c0_44 = arith.constant 0 : index
      %c0_45 = arith.constant 0 : index
      %50 = vector.load %arg19[%c0_43, %c0_44, %c0_45] : memref<4x8x8xbf16, #tpu.memory_space<vmem>>, vector<1x8x8xbf16>
      %51 = vector.shape_cast %50 : vector<1x8x8xbf16> to vector<8x8xbf16>
      %52 = vector.shape_cast %49 : vector<8x8xbf16> to vector<1x8x8xbf16>
      tpu.vector_store %arg19[%c0_43, %c0_44, %c0_45], %52 {strides = array<i32>} : memref<4x8x8xbf16, #tpu.memory_space<vmem>>, vector<1x8x8xbf16>,
      %53 = vector.extract_strided_slice %42 {offsets = [0, 0], sizes = [8, 8], strides = [1, 1]} : vector<8x32xf32> to vector<8x8xf32>
      %54 = arith.truncf %53 : vector<8x8xf32> to vector<8x8xbf16>
      %c0_46 = arith.constant 0 : index
      %c0_47 = arith.constant 0 : index
      %c0_48 = arith.constant 0 : index
      %55 = vector.load %arg20[%c0_46, %c0_47, %c0_48] : memref<4x8x8xbf16, #tpu.memory_space<vmem>>, vector<1x8x8xbf16>
      %56 = vector.shape_cast %55 : vector<1x8x8xbf16> to vector<8x8xbf16>
      %57 = vector.shape_cast %54 : vector<8x8xbf16> to vector<1x8x8xbf16>
      tpu.vector_store %arg20[%c0_46, %c0_47, %c0_48], %57 {strides = array<i32>} : memref<4x8x8xbf16, #tpu.memory_space<vmem>>, vector<1x8x8xbf16>,
      %58 = vector.extract_strided_slice %32 {offsets = [0, 8], sizes = [8, 8], strides = [1, 1]} : vector<8x32xf32> to vector<8x8xf32>
      %59 = arith.truncf %58 : vector<8x8xf32> to vector<8x8xbf16>
      %c1 = arith.constant 1 : index
      %c0_49 = arith.constant 0 : index
      %c0_50 = arith.constant 0 : index
      %60 = vector.load %arg18[%c1, %c0_49, %c0_50] : memref<4x8x8xbf16, #tpu.memory_space<vmem>>, vector<1x8x8xbf16>
      %61 = vector.shape_cast %60 : vector<1x8x8xbf16> to vector<8x8xbf16>
      %62 = vector.shape_cast %59 : vector<8x8xbf16> to vector<1x8x8xbf16>
      tpu.vector_store %arg18[%c1, %c0_49, %c0_50], %62 {strides = array<i32>} : memref<4x8x8xbf16, #tpu.memory_space<vmem>>, vector<1x8x8xbf16>,
      %63 = vector.extract_strided_slice %37 {offsets = [0, 8], sizes = [8, 8], strides = [1, 1]} : vector<8x32xf32> to vector<8x8xf32>
      %64 = arith.truncf %63 : vector<8x8xf32> to vector<8x8xbf16>
      %c1_51 = arith.constant 1 : index
      %c0_52 = arith.constant 0 : index
      %c0_53 = arith.constant 0 : index
      %65 = vector.load %arg19[%c1_51, %c0_52, %c0_53] : memref<4x8x8xbf16, #tpu.memory_space<vmem>>, vector<1x8x8xbf16>
      %66 = vector.shape_cast %65 : vector<1x8x8xbf16> to vector<8x8xbf16>
      %67 = vector.shape_cast %64 : vector<8x8xbf16> to vector<1x8x8xbf16>
      tpu.vector_store %arg19[%c1_51, %c0_52, %c0_53], %67 {strides = array<i32>} : memref<4x8x8xbf16, #tpu.memory_space<vmem>>, vector<1x8x8xbf16>,
      %68 = vector.extract_strided_slice %42 {offsets = [0, 8], sizes = [8, 8], strides = [1, 1]} : vector<8x32xf32> to vector<8x8xf32>
      %69 = arith.truncf %68 : vector<8x8xf32> to vector<8x8xbf16>
      %c1_54 = arith.constant 1 : index
      %c0_55 = arith.constant 0 : index
      %c0_56 = arith.constant 0 : index
      %70 = vector.load %arg20[%c1_54, %c0_55, %c0_56] : memref<4x8x8xbf16, #tpu.memory_space<vmem>>, vector<1x8x8xbf16>
      %71 = vector.shape_cast %70 : vector<1x8x8xbf16> to vector<8x8xbf16>
      %72 = vector.shape_cast %69 : vector<8x8xbf16> to vector<1x8x8xbf16>
      tpu.vector_store %arg20[%c1_54, %c0_55, %c0_56], %72 {strides = array<i32>} : memref<4x8x8xbf16, #tpu.memory_space<vmem>>, vector<1x8x8xbf16>,
      %73 = vector.extract_strided_slice %32 {offsets = [0, 16], sizes = [8, 8], strides = [1, 1]} : vector<8x32xf32> to vector<8x8xf32>
      %74 = arith.truncf %73 : vector<8x8xf32> to vector<8x8xbf16>
      %c2 = arith.constant 2 : index
      %c0_57 = arith.constant 0 : index
      %c0_58 = arith.constant 0 : index
      %75 = vector.load %arg18[%c2, %c0_57, %c0_58] : memref<4x8x8xbf16, #tpu.memory_space<vmem>>, vector<1x8x8xbf16>
      %76 = vector.shape_cast %75 : vector<1x8x8xbf16> to vector<8x8xbf16>
      %77 = vector.shape_cast %74 : vector<8x8xbf16> to vector<1x8x8xbf16>
      tpu.vector_store %arg18[%c2, %c0_57, %c0_58], %77 {strides = array<i32>} : memref<4x8x8xbf16, #tpu.memory_space<vmem>>, vector<1x8x8xbf16>,
      %78 = vector.extract_strided_slice %37 {offsets = [0, 16], sizes = [8, 8], strides = [1, 1]} : vector<8x32xf32> to vector<8x8xf32>
      %79 = arith.truncf %78 : vector<8x8xf32> to vector<8x8xbf16>
      %c2_59 = arith.constant 2 : index
      %c0_60 = arith.constant 0 : index
      %c0_61 = arith.constant 0 : index
      %80 = vector.load %arg19[%c2_59, %c0_60, %c0_61] : memref<4x8x8xbf16, #tpu.memory_space<vmem>>, vector<1x8x8xbf16>
      %81 = vector.shape_cast %80 : vector<1x8x8xbf16> to vector<8x8xbf16>
      %82 = vector.shape_cast %79 : vector<8x8xbf16> to vector<1x8x8xbf16>
      tpu.vector_store %arg19[%c2_59, %c0_60, %c0_61], %82 {strides = array<i32>} : memref<4x8x8xbf16, #tpu.memory_space<vmem>>, vector<1x8x8xbf16>,
      %83 = vector.extract_strided_slice %42 {offsets = [0, 16], sizes = [8, 8], strides = [1, 1]} : vector<8x32xf32> to vector<8x8xf32>
      %84 = arith.truncf %83 : vector<8x8xf32> to vector<8x8xbf16>
      %c2_62 = arith.constant 2 : index
      %c0_63 = arith.constant 0 : index
      %c0_64 = arith.constant 0 : index
      %85 = vector.load %arg20[%c2_62, %c0_63, %c0_64] : memref<4x8x8xbf16, #tpu.memory_space<vmem>>, vector<1x8x8xbf16>
      %86 = vector.shape_cast %85 : vector<1x8x8xbf16> to vector<8x8xbf16>
      %87 = vector.shape_cast %84 : vector<8x8xbf16> to vector<1x8x8xbf16>
      tpu.vector_store %arg20[%c2_62, %c0_63, %c0_64], %87 {strides = array<i32>} : memref<4x8x8xbf16, #tpu.memory_space<vmem>>, vector<1x8x8xbf16>,
      %88 = vector.extract_strided_slice %32 {offsets = [0, 24], sizes = [8, 8], strides = [1, 1]} : vector<8x32xf32> to vector<8x8xf32>
      %89 = arith.truncf %88 : vector<8x8xf32> to vector<8x8xbf16>
      %c3 = arith.constant 3 : index
      %c0_65 = arith.constant 0 : index
      %c0_66 = arith.constant 0 : index
      %90 = vector.load %arg18[%c3, %c0_65, %c0_66] : memref<4x8x8xbf16, #tpu.memory_space<vmem>>, vector<1x8x8xbf16>
      %91 = vector.shape_cast %90 : vector<1x8x8xbf16> to vector<8x8xbf16>
      %92 = vector.shape_cast %89 : vector<8x8xbf16> to vector<1x8x8xbf16>
      tpu.vector_store %arg18[%c3, %c0_65, %c0_66], %92 {strides = array<i32>} : memref<4x8x8xbf16, #tpu.memory_space<vmem>>, vector<1x8x8xbf16>,
      %93 = vector.extract_strided_slice %37 {offsets = [0, 24], sizes = [8, 8], strides = [1, 1]} : vector<8x32xf32> to vector<8x8xf32>
      %94 = arith.truncf %93 : vector<8x8xf32> to vector<8x8xbf16>
      %c3_67 = arith.constant 3 : index
      %c0_68 = arith.constant 0 : index
      %c0_69 = arith.constant 0 : index
      %95 = vector.load %arg19[%c3_67, %c0_68, %c0_69] : memref<4x8x8xbf16, #tpu.memory_space<vmem>>, vector<1x8x8xbf16>
      %96 = vector.shape_cast %95 : vector<1x8x8xbf16> to vector<8x8xbf16>
      %97 = vector.shape_cast %94 : vector<8x8xbf16> to vector<1x8x8xbf16>
      tpu.vector_store %arg19[%c3_67, %c0_68, %c0_69], %97 {strides = array<i32>} : memref<4x8x8xbf16, #tpu.memory_space<vmem>>, vector<1x8x8xbf16>,
      %98 = vector.extract_strided_slice %42 {offsets = [0, 24], sizes = [8, 8], strides = [1, 1]} : vector<8x32xf32> to vector<8x8xf32>
      %99 = arith.truncf %98 : vector<8x8xf32> to vector<8x8xbf16>
      %c3_70 = arith.constant 3 : index
      %c0_71 = arith.constant 0 : index
      %c0_72 = arith.constant 0 : index
      %100 = vector.load %arg20[%c3_70, %c0_71, %c0_72] : memref<4x8x8xbf16, #tpu.memory_space<vmem>>, vector<1x8x8xbf16>
      %101 = vector.shape_cast %100 : vector<1x8x8xbf16> to vector<8x8xbf16>
      %102 = vector.shape_cast %99 : vector<8x8xbf16> to vector<1x8x8xbf16>
      tpu.vector_store %arg20[%c3_70, %c0_71, %c0_72], %102 {strides = array<i32>} : memref<4x8x8xbf16, #tpu.memory_space<vmem>>, vector<1x8x8xbf16>,
      %cst_73 = arith.constant 0.000000e+00 : f32
      %103 = vector.broadcast %cst_73 : f32 to vector<8x32xf32>
      %c0_i32_74 = arith.constant 0 : i32
      %c2_i32 = arith.constant 2 : i32
      %104 = arith.addi %c0_i32_74, %c2_i32 : i32
      %c1_i32_75 = arith.constant 1 : i32
      %105 = scf.for %arg23 = %c0_i32_74 to %104 step %c1_i32_75 iter_args(%arg24 = %103) -> (vector<8x32xf32>)  : i32 {
        %c2_i32_90 = arith.constant 2 : i32
        %137 = arith.muli %arg23, %c2_i32_90 : i32
        %138 = tpu.assume_multiple %137, 2 : i32
        %139 = arith.index_cast %138 : i32 to index
        %c0_91 = arith.constant 0 : index
        %c0_92 = arith.constant 0 : index
        %140 = vector.load %arg18[%139, %c0_91, %c0_92] : memref<4x8x8xbf16, #tpu.memory_space<vmem>>, vector<2x8x8xbf16>
        %141 = arith.index_cast %138 : i32 to index
        %c0_93 = arith.constant 0 : index
        %c0_94 = arith.constant 0 : index
        %142 = vector.load %arg19[%141, %c0_93, %c0_94] : memref<4x8x8xbf16, #tpu.memory_space<vmem>>, vector<2x8x8xbf16>
        %143 = arith.index_cast %138 : i32 to index
        %c0_95 = arith.constant 0 : index
        %c0_96 = arith.constant 0 : index
        %144 = vector.load %arg20[%143, %c0_95, %c0_96] : memref<4x8x8xbf16, #tpu.memory_space<vmem>>, vector<2x8x8xbf16>
        %145 = arith.index_cast %138 : i32 to index
        %c0_97 = arith.constant 0 : index
        %c0_98 = arith.constant 0 : index
        %146 = vector.load %arg9[%145, %c0_97, %c0_98] : memref<4x8x32xbf16, #tpu.memory_space<vmem>>, vector<2x8x32xbf16>
        "tpu.trace_start"() <{level = 10 : i32, message = "hqe,hke->hqk"}> : () -> ()
        %cst_99 = arith.constant dense<0.000000e+00> : vector<2x8x8xf32>
        %147 = tpu.matmul %140, %142, %cst_99 {dimension_numbers = #tpu.dot_dimension_numbers<[2], [2], [1], [1], [0, 0, 0, 1, 1, 1], [0], [0]>} : vector<2x8x8xbf16>, vector<2x8x8xbf16>, vector<2x8x8xf32> -> vector<2x8x8xf32>
        "tpu.trace_stop"() : () -> ()
        %cst_100 = arith.constant dense<0xFF800000> : vector<2x8xf32>
        %148 = vector.multi_reduction <maximumf>, %147, %cst_100 [2] : vector<2x8x8xf32> to vector<2x8xf32>
        %149 = vector.shape_cast %148 : vector<2x8xf32> to vector<2x8x1xf32>
        %150 = vector.broadcast %149 : vector<2x8x1xf32> to vector<2x8x8xf32>
        %151 = arith.subf %147, %150 : vector<2x8x8xf32>
        %152 = math.exp %151 : vector<2x8x8xf32>
        %cst_101 = arith.constant dense<0.000000e+00> : vector<2x8xf32>
        %153 = vector.multi_reduction <add>, %152, %cst_101 [2] : vector<2x8x8xf32> to vector<2x8xf32>
        %154 = vector.shape_cast %153 : vector<2x8xf32> to vector<2x8x1xf32>
        %155 = tpu.reciprocal %154 {approx = true} : vector<2x8x1xf32> -> vector<2x8x1xf32>
        %156 = vector.broadcast %155 : vector<2x8x1xf32> to vector<2x8x8xf32>
        %157 = arith.mulf %152, %156 : vector<2x8x8xf32>
        %158 = arith.truncf %157 : vector<2x8x8xf32> to vector<2x8x8xbf16>
        "tpu.trace_start"() <{level = 10 : i32, message = "hqk,hke->hqe"}> : () -> ()
        %cst_102 = arith.constant dense<0.000000e+00> : vector<2x8x8xf32>
        %159 = tpu.matmul %158, %144, %cst_102 {dimension_numbers = #tpu.dot_dimension_numbers<[2], [1], [1], [2], [0, 0, 0, 1, 1, 2], [0], [0]>} : vector<2x8x8xbf16>, vector<2x8x8xbf16>, vector<2x8x8xf32> -> vector<2x8x8xf32>
        "tpu.trace_stop"() : () -> ()
        %160 = arith.truncf %159 : vector<2x8x8xf32> to vector<2x8x8xbf16>
        "tpu.trace_start"() <{level = 10 : i32, message = "hse,hed->hsd"}> : () -> ()
        %cst_103 = arith.constant dense<0.000000e+00> : vector<2x8x32xf32>
        %161 = tpu.matmul %160, %146, %cst_103 {dimension_numbers = #tpu.dot_dimension_numbers<[2], [1], [1], [2], [0, 0, 0, 1, 1, 2], [0], [0]>} : vector<2x8x8xbf16>, vector<2x8x32xbf16>, vector<2x8x32xf32> -> vector<2x8x32xf32>
        "tpu.trace_stop"() : () -> ()
        %cst_104 = arith.constant dense<0.000000e+00> : vector<8x32xf32>
        %162 = vector.multi_reduction <add>, %161, %cst_104 [0] : vector<2x8x32xf32> to vector<8x32xf32>
        %163 = arith.addf %arg24, %162 : vector<8x32xf32>
        scf.yield %163 : vector<8x32xf32>
      }
      %c2_i32_76 = arith.constant 2 : i32
      %c0_77 = arith.constant 0 : index
      %c0_78 = arith.constant 0 : index
      %106 = vector.load %arg10[%c0_77, %c0_78] : memref<1x32xf32, #tpu.memory_space<vmem>>, vector<1x32xf32>
      %107 = vector.broadcast %106 : vector<1x32xf32> to vector<8x32xf32>
      %108 = arith.addf %105, %107 : vector<8x32xf32>
      %109 = arith.addf %108, %24 : vector<8x32xf32>
      %cst_79 = arith.constant dense<0.000000e+00> : vector<8xf32>
      %110 = vector.multi_reduction <add>, %109, %cst_79 [1] : vector<8x32xf32> to vector<8xf32>
      %111 = vector.shape_cast %110 : vector<8xf32> to vector<8x1xf32>
      %cst_80 = arith.constant 3.200000e+01 : f32
      %112 = vector.broadcast %cst_80 : f32 to vector<8x1xf32>
      %113 = arith.divf %111, %112 : vector<8x1xf32>
      %114 = arith.mulf %109, %109 : vector<8x32xf32>
      %cst_81 = arith.constant dense<0.000000e+00> : vector<8xf32>
      %115 = vector.multi_reduction <add>, %114, %cst_81 [1] : vector<8x32xf32> to vector<8xf32>
      %116 = vector.shape_cast %115 : vector<8xf32> to vector<8x1xf32>
      %cst_82 = arith.constant 3.200000e+01 : f32
      %117 = vector.broadcast %cst_82 : f32 to vector<8x1xf32>
      %118 = arith.divf %116, %117 : vector<8x1xf32>
      %119 = arith.mulf %113, %113 : vector<8x1xf32>
      %120 = arith.subf %118, %119 : vector<8x1xf32>
      %cst_83 = arith.constant 0.000000e+00 : f32
      %121 = vector.broadcast %cst_83 : f32 to vector<8x1xf32>
      %122 = arith.maximumf %120, %121 : vector<8x1xf32>
      %123 = vector.broadcast %113 : vector<8x1xf32> to vector<8x32xf32>
      %124 = arith.subf %109, %123 : vector<8x32xf32>
      %cst_84 = arith.constant 9.99999974E-6 : f32
      %125 = vector.broadcast %cst_84 : f32 to vector<8x1xf32>
      %126 = arith.addf %122, %125 : vector<8x1xf32>
      %127 = math.rsqrt %126 : vector<8x1xf32>
      %128 = vector.broadcast %127 : vector<8x1xf32> to vector<8x32xf32>
      %129 = arith.mulf %124, %128 : vector<8x32xf32>
      %130 = vector.broadcast %0 : vector<1x32xf32> to vector<8x32xf32>
      %131 = arith.mulf %129, %130 : vector<8x32xf32>
      %132 = vector.broadcast %1 : vector<1x32xf32> to vector<8x32xf32>
      %133 = arith.addf %131, %132 : vector<8x32xf32>
      %c0_85 = arith.constant 0 : index
      %c0_86 = arith.constant 0 : index
      %134 = vector.load %arg21[%c0_85, %c0_86] : memref<8x32xf32, #tpu.memory_space<vmem>>, vector<8x32xf32>
      tpu.vector_store %arg21[%c0_85, %c0_86], %133 {strides = array<i32>} : memref<8x32xf32, #tpu.memory_space<vmem>>, vector<8x32xf32>,
      %cst_87 = arith.constant 0.000000e+00 : f32
      %135 = vector.broadcast %cst_87 : f32 to vector<8x32xf32>
      %c0_88 = arith.constant 0 : index
      %c0_89 = arith.constant 0 : index
      %136 = vector.load %arg22[%c0_88, %c0_89] : memref<8x32xf32, #tpu.memory_space<vmem>>, vector<8x32xf32>
      tpu.vector_store %arg22[%c0_88, %c0_89], %135 {strides = array<i32>} : memref<8x32xf32, #tpu.memory_space<vmem>>, vector<8x32xf32>,
    } else {
    }
    %c0_4 = arith.constant 0 : index
    %c0_5 = arith.constant 0 : index
    %5 = vector.load %arg21[%c0_4, %c0_5] : memref<8x32xf32, #tpu.memory_space<vmem>>, vector<8x32xf32>
    %6 = arith.truncf %5 : vector<8x32xf32> to vector<8x32xbf16>
    %c0_6 = arith.constant 0 : index
    %c0_7 = arith.constant 0 : index
    %7 = vector.load %arg11[%c0_6, %c0_7] : memref<32x128xbf16, #tpu.memory_space<vmem>>, vector<32x128xbf16>
    %cst = arith.constant dense<0.000000e+00> : vector<8x128xf32>
    %8 = tpu.matmul %6, %7, %cst {dimension_numbers = #tpu.dot_dimension_numbers<[1], [0], [0], [1], [0, 0, 1, 1], [], []>} : vector<8x32xbf16>, vector<32x128xbf16>, vector<8x128xf32> -> vector<8x128xf32>
    %c0_8 = arith.constant 0 : index
    %c0_9 = arith.constant 0 : index
    %9 = vector.load %arg12[%c0_8, %c0_9] : memref<1x128xf32, #tpu.memory_space<vmem>>, vector<1x128xf32>
    %10 = vector.broadcast %9 : vector<1x128xf32> to vector<8x128xf32>
    %11 = arith.addf %8, %10 : vector<8x128xf32>
    %cst_10 = arith.constant 0.000000e+00 : f32
    %12 = vector.broadcast %cst_10 : f32 to vector<8x128xf32>
    %13 = arith.maximumf %11, %12 : vector<8x128xf32>
    %c0_11 = arith.constant 0 : index
    %c0_12 = arith.constant 0 : index
    %14 = vector.load %arg22[%c0_11, %c0_12] : memref<8x32xf32, #tpu.memory_space<vmem>>, vector<8x32xf32>
    %15 = arith.truncf %13 : vector<8x128xf32> to vector<8x128xbf16>
    %c0_13 = arith.constant 0 : index
    %c0_14 = arith.constant 0 : index
    %16 = vector.load %arg13[%c0_13, %c0_14] : memref<128x32xbf16, #tpu.memory_space<vmem>>, vector<128x32xbf16>
    %cst_15 = arith.constant dense<0.000000e+00> : vector<8x32xf32>
    %17 = tpu.matmul %15, %16, %cst_15 {dimension_numbers = #tpu.dot_dimension_numbers<[1], [0], [0], [1], [0, 0, 1, 1], [], []>} : vector<8x128xbf16>, vector<128x32xbf16>, vector<8x32xf32> -> vector<8x32xf32>
    %18 = arith.addf %14, %17 : vector<8x32xf32>
    %c0_16 = arith.constant 0 : index
    %c0_17 = arith.constant 0 : index
    %19 = vector.load %arg22[%c0_16, %c0_17] : memref<8x32xf32, #tpu.memory_space<vmem>>, vector<8x32xf32>
    tpu.vector_store %arg22[%c0_16, %c0_17], %18 {strides = array<i32>} : memref<8x32xf32, #tpu.memory_space<vmem>>, vector<8x32xf32>,
    %c1_i32 = arith.constant 1 : i32
    %20 = arith.cmpi eq, %arg1, %c1_i32 : i32
    %21 = arith.extui %20 : i1 to i32
    %c0_i32_18 = arith.constant 0 : i32
    %22 = arith.cmpi ne, %21, %c0_i32_18 : i32
    scf.if %22 {
      %c0_19 = arith.constant 0 : index
      %c0_20 = arith.constant 0 : index
      %23 = vector.load %arg22[%c0_19, %c0_20] : memref<8x32xf32, #tpu.memory_space<vmem>>, vector<8x32xf32>
      %c0_21 = arith.constant 0 : index
      %c0_22 = arith.constant 0 : index
      %24 = vector.load %arg14[%c0_21, %c0_22] : memref<1x32xf32, #tpu.memory_space<vmem>>, vector<1x32xf32>
      %25 = vector.broadcast %24 : vector<1x32xf32> to vector<8x32xf32>
      %26 = arith.addf %23, %25 : vector<8x32xf32>
      %c0_23 = arith.constant 0 : index
      %c0_24 = arith.constant 0 : index
      %27 = vector.load %arg21[%c0_23, %c0_24] : memref<8x32xf32, #tpu.memory_space<vmem>>, vector<8x32xf32>
      %28 = arith.addf %26, %27 : vector<8x32xf32>
      %cst_25 = arith.constant dense<0.000000e+00> : vector<8xf32>
      %29 = vector.multi_reduction <add>, %28, %cst_25 [1] : vector<8x32xf32> to vector<8xf32>
      %30 = vector.shape_cast %29 : vector<8xf32> to vector<8x1xf32>
      %cst_26 = arith.constant 3.200000e+01 : f32
      %31 = vector.broadcast %cst_26 : f32 to vector<8x1xf32>
      %32 = arith.divf %30, %31 : vector<8x1xf32>
      %33 = arith.mulf %28, %28 : vector<8x32xf32>
      %cst_27 = arith.constant dense<0.000000e+00> : vector<8xf32>
      %34 = vector.multi_reduction <add>, %33, %cst_27 [1] : vector<8x32xf32> to vector<8xf32>
      %35 = vector.shape_cast %34 : vector<8xf32> to vector<8x1xf32>
      %cst_28 = arith.constant 3.200000e+01 : f32
      %36 = vector.broadcast %cst_28 : f32 to vector<8x1xf32>
      %37 = arith.divf %35, %36 : vector<8x1xf32>
      %38 = arith.mulf %32, %32 : vector<8x1xf32>
      %39 = arith.subf %37, %38 : vector<8x1xf32>
      %cst_29 = arith.constant 0.000000e+00 : f32
      %40 = vector.broadcast %cst_29 : f32 to vector<8x1xf32>
      %41 = arith.maximumf %39, %40 : vector<8x1xf32>
      %42 = vector.broadcast %32 : vector<8x1xf32> to vector<8x32xf32>
      %43 = arith.subf %28, %42 : vector<8x32xf32>
      %cst_30 = arith.constant 9.99999974E-6 : f32
      %44 = vector.broadcast %cst_30 : f32 to vector<8x1xf32>
      %45 = arith.addf %41, %44 : vector<8x1xf32>
      %46 = math.rsqrt %45 : vector<8x1xf32>
      %47 = vector.broadcast %46 : vector<8x1xf32> to vector<8x32xf32>
      %48 = arith.mulf %43, %47 : vector<8x32xf32>
      %49 = vector.broadcast %0 : vector<1x32xf32> to vector<8x32xf32>
      %50 = arith.mulf %48, %49 : vector<8x32xf32>
      %51 = vector.broadcast %1 : vector<1x32xf32> to vector<8x32xf32>
      %52 = arith.addf %50, %51 : vector<8x32xf32>
      %c0_31 = arith.constant 0 : index
      %c0_32 = arith.constant 0 : index
      %c0_33 = arith.constant 0 : index
      %53 = vector.load %arg17[%c0_31, %c0_32, %c0_33] : memref<1x8x32xf32, #tpu.memory_space<vmem>>, vector<1x8x32xf32>
      %54 = vector.shape_cast %53 : vector<1x8x32xf32> to vector<8x32xf32>
      %55 = vector.shape_cast %52 : vector<8x32xf32> to vector<1x8x32xf32>
      tpu.vector_store %arg17[%c0_31, %c0_32, %c0_33], %55 {strides = array<i32>} : memref<1x8x32xf32, #tpu.memory_space<vmem>>, vector<1x8x32xf32>,
    } else {
    }
    return
  }
  func.func @transform_0(%arg0: i32, %arg1: i32) -> (i32, i32, i32) {
    %c0_i32 = arith.constant 0 : i32
    %c0_i32_0 = arith.constant 0 : i32
    %c0_i32_1 = arith.constant 0 : i32
    return %arg0, %c0_i32, %c0_i32_0 : i32, i32, i32
  }
  func.func @transform_1(%arg0: i32, %arg1: i32) -> (i32, i32) {
    %c0_i32 = arith.constant 0 : i32
    %c0_i32_0 = arith.constant 0 : i32
    %c0_i32_1 = arith.constant 0 : i32
    return %c0_i32, %c0_i32_0 : i32, i32
  }
  func.func @transform_2(%arg0: i32, %arg1: i32) -> (i32, i32) {
    %c0_i32 = arith.constant 0 : i32
    %c0_i32_0 = arith.constant 0 : i32
    %c0_i32_1 = arith.constant 0 : i32
    return %c0_i32, %c0_i32_0 : i32, i32
  }
  func.func @transform_3(%arg0: i32, %arg1: i32) -> (i32, i32) {
    %c0_i32 = arith.constant 0 : i32
    %c0_i32_0 = arith.constant 0 : i32
    %c0_i32_1 = arith.constant 0 : i32
    return %c0_i32, %c0_i32_0 : i32, i32
  }
  func.func @transform_4(%arg0: i32, %arg1: i32) -> (i32, i32) {
    %c0_i32 = arith.constant 0 : i32
    %c0_i32_0 = arith.constant 0 : i32
    %c0_i32_1 = arith.constant 0 : i32
    return %c0_i32, %c0_i32_0 : i32, i32
  }
  func.func @transform_5(%arg0: i32, %arg1: i32) -> (i32, i32) {
    %c0_i32 = arith.constant 0 : i32
    %c0_i32_0 = arith.constant 0 : i32
    %c0_i32_1 = arith.constant 0 : i32
    return %c0_i32, %c0_i32_0 : i32, i32
  }
  func.func @transform_6(%arg0: i32, %arg1: i32) -> (i32, i32) {
    %c0_i32 = arith.constant 0 : i32
    %c0_i32_0 = arith.constant 0 : i32
    %c0_i32_1 = arith.constant 0 : i32
    return %c0_i32, %c0_i32_0 : i32, i32
  }
  func.func @transform_7(%arg0: i32, %arg1: i32) -> (i32, i32, i32) {
    %c0_i32 = arith.constant 0 : i32
    %c0_i32_0 = arith.constant 0 : i32
    %c0_i32_1 = arith.constant 0 : i32
    %c0_i32_2 = arith.constant 0 : i32
    return %c0_i32, %c0_i32_0, %c0_i32_1 : i32, i32, i32
  }
  func.func @transform_8(%arg0: i32, %arg1: i32) -> (i32, i32) {
    %c0_i32 = arith.constant 0 : i32
    %c0_i32_0 = arith.constant 0 : i32
    %c0_i32_1 = arith.constant 0 : i32
    return %c0_i32, %c0_i32_0 : i32, i32
  }
  func.func @transform_9(%arg0: i32, %arg1: i32) -> (i32, i32) {
    %c0_i32 = arith.constant 0 : i32
    %c0_i32_0 = arith.constant 0 : i32
    return %c0_i32, %arg1 : i32, i32
  }
  func.func @transform_10(%arg0: i32, %arg1: i32) -> (i32, i32) {
    %c0_i32 = arith.constant 0 : i32
    %c0_i32_0 = arith.constant 0 : i32
    return %c0_i32, %arg1 : i32, i32
  }
  func.func @transform_11(%arg0: i32, %arg1: i32) -> (i32, i32) {
    %c0_i32 = arith.constant 0 : i32
    %c0_i32_0 = arith.constant 0 : i32
    return %arg1, %c0_i32 : i32, i32
  }
  func.func @transform_12(%arg0: i32, %arg1: i32) -> (i32, i32) {
    %c0_i32 = arith.constant 0 : i32
    %c0_i32_0 = arith.constant 0 : i32
    %c0_i32_1 = arith.constant 0 : i32
    return %c0_i32, %c0_i32_0 : i32, i32
  }
  func.func @transform_13(%arg0: i32, %arg1: i32) -> (i32, i32) {
    %c0_i32 = arith.constant 0 : i32
    %c0_i32_0 = arith.constant 0 : i32
    %c0_i32_1 = arith.constant 0 : i32
    return %c0_i32, %c0_i32_0 : i32, i32
  }
  func.func @transform_14(%arg0: i32, %arg1: i32) -> (i32, i32) {
    %c0_i32 = arith.constant 0 : i32
    %c0_i32_0 = arith.constant 0 : i32
    %c0_i32_1 = arith.constant 0 : i32
    return %c0_i32, %c0_i32_0 : i32, i32
  }
  func.func @transform_15(%arg0: i32, %arg1: i32) -> (i32, i32, i32) {
    %c0_i32 = arith.constant 0 : i32
    %c0_i32_0 = arith.constant 0 : i32
    %c0_i32_1 = arith.constant 0 : i32
    return %arg0, %c0_i32, %c0_i32_0 : i32, i32, i32
  }
}

module attributes {stable_mosaic.version = 11 : i64} {
  func.func @_encoder_layer_kernel(%arg0: i32, %arg1: i32, %arg2: memref<1x8x32xf32, #tpu.memory_space<vmem>>, %arg3: memref<32x32xbf16, #tpu.memory_space<vmem>>, %arg4: memref<1x32xf32, #tpu.memory_space<vmem>>, %arg5: memref<32x32xbf16, #tpu.memory_space<vmem>>, %arg6: memref<1x32xf32, #tpu.memory_space<vmem>>, %arg7: memref<32x32xbf16, #tpu.memory_space<vmem>>, %arg8: memref<1x32xf32, #tpu.memory_space<vmem>>, %arg9: memref<4x8x32xbf16, #tpu.memory_space<vmem>>, %arg10: memref<1x32xf32, #tpu.memory_space<vmem>>, %arg11: memref<32x128xbf16, #tpu.memory_space<vmem>>, %arg12: memref<1x128xf32, #tpu.memory_space<vmem>>, %arg13: memref<128x32xbf16, #tpu.memory_space<vmem>>, %arg14: memref<1x32xf32, #tpu.memory_space<vmem>>, %arg15: memref<1x32xf32, #tpu.memory_space<vmem>>, %arg16: memref<1x32xf32, #tpu.memory_space<vmem>>, %arg17: memref<1x8x32xf32, #tpu.memory_space<vmem>>, %arg18: memref<4x8x8xbf16, #tpu.memory_space<vmem>>, %arg19: memref<4x8x8xbf16, #tpu.memory_space<vmem>>, %arg20: memref<4x8x8xbf16, #tpu.memory_space<vmem>>, %arg21: memref<8x32xf32, #tpu.memory_space<vmem>>, %arg22: memref<8x32xf32, #tpu.memory_space<vmem>>) attributes {dimension_semantics = [#tpu.dimension_semantics<parallel>, #tpu.dimension_semantics<arbitrary>], iteration_bounds = array<i64: 2, 2>, scalar_prefetch = 0 : i64, scratch_operands = 5 : i64, tpu.core_type = #tpu.core_type<tc>, window_params = [{transform_indices = @transform_0, window_bounds = array<i64: 1, 8, 32>}, {pipeline_mode = #tpu.pipeline_mode<synchronous>, transform_indices = @transform_1, window_bounds = array<i64: 32, 32>}, {pipeline_mode = #tpu.pipeline_mode<synchronous>, transform_indices = @transform_2, window_bounds = array<i64: 1, 32>}, {pipeline_mode = #tpu.pipeline_mode<synchronous>, transform_indices = @transform_3, window_bounds = array<i64: 32, 32>}, {pipeline_mode = #tpu.pipeline_mode<synchronous>, transform_indices = @transform_4, window_bounds = array<i64: 1, 32>}, {pipeline_mode = #tpu.pipeline_mode<synchronous>, transform_indices = @transform_5, window_bounds = array<i64: 32, 32>}, {pipeline_mode = #tpu.pipeline_mode<synchronous>, transform_indices = @transform_6, window_bounds = array<i64: 1, 32>}, {pipeline_mode = #tpu.pipeline_mode<synchronous>, transform_indices = @transform_7, window_bounds = array<i64: 4, 8, 32>}, {pipeline_mode = #tpu.pipeline_mode<synchronous>, transform_indices = @transform_8, window_bounds = array<i64: 1, 32>}, {transform_indices = @transform_9, window_bounds = array<i64: 32, 128>}, {transform_indices = @transform_10, window_bounds = array<i64: 1, 128>}, {transform_indices = @transform_11, window_bounds = array<i64: 128, 32>}, {pipeline_mode = #tpu.pipeline_mode<synchronous>, transform_indices = @transform_12, window_bounds = array<i64: 1, 32>}, {pipeline_mode = #tpu.pipeline_mode<synchronous>, transform_indices = @transform_13, window_bounds = array<i64: 1, 32>}, {pipeline_mode = #tpu.pipeline_mode<synchronous>, transform_indices = @transform_14, window_bounds = array<i64: 1, 32>}, {transform_indices = @transform_15, window_bounds = array<i64: 1, 8, 32>}]} {
    %c0 = arith.constant 0 : index
    %c0_0 = arith.constant 0 : index
    %0 = vector.load %arg15[%c0, %c0_0] : memref<1x32xf32, #tpu.memory_space<vmem>>, vector<1x32xf32>
    %c0_1 = arith.constant 0 : index
    %c0_2 = arith.constant 0 : index
    %1 = vector.load %arg16[%c0_1, %c0_2] : memref<1x32xf32, #tpu.memory_space<vmem>>, vector<1x32xf32>
    %c0_i32 = arith.constant 0 : i32
    %2 = arith.cmpi eq, %arg1, %c0_i32 : i32
    %3 = arith.extui %2 : i1 to i32
    %c0_i32_3 = arith.constant 0 : i32
    %4 = arith.cmpi ne, %3, %c0_i32_3 : i32
    scf.if %4 {
      %c0_19 = arith.constant 0 : index
      %c0_20 = arith.constant 0 : index
      %c0_21 = arith.constant 0 : index
      %23 = vector.load %arg2[%c0_19, %c0_20, %c0_21] : memref<1x8x32xf32, #tpu.memory_space<vmem>>, vector<1x8x32xf32>
      %24 = vector.shape_cast %23 : vector<1x8x32xf32> to vector<8x32xf32>
      %c0_22 = arith.constant 0 : index
      %c0_23 = arith.constant 0 : index
      %c0_24 = arith.constant 0 : index
      %25 = vector.load %arg2[%c0_22, %c0_23, %c0_24] : memref<1x8x32xf32, #tpu.memory_space<vmem>>, vector<1x8x32xf32>
      %26 = vector.shape_cast %25 : vector<1x8x32xf32> to vector<8x32xf32>
      %27 = arith.truncf %26 : vector<8x32xf32> to vector<8x32xbf16>
      %c0_25 = arith.constant 0 : index
      %c0_26 = arith.constant 0 : index
      %28 = vector.load %arg3[%c0_25, %c0_26] : memref<32x32xbf16, #tpu.memory_space<vmem>>, vector<32x32xbf16>
      %cst_27 = arith.constant dense<0.000000e+00> : vector<8x32xf32>
      %29 = tpu.matmul %27, %28, %cst_27 {dimension_numbers = #tpu.dot_dimension_numbers<[1], [0], [0], [1], [0, 0, 1, 1], [], []>} : vector<8x32xbf16>, vector<32x32xbf16>, vector<8x32xf32> -> vector<8x32xf32>
      %c0_28 = arith.constant 0 : index
      %c0_29 = arith.constant 0 : index
      %30 = vector.load %arg4[%c0_28, %c0_29] : memref<1x32xf32, #tpu.memory_space<vmem>>, vector<1x32xf32>
      %31 = vector.broadcast %30 : vector<1x32xf32> to vector<8x32xf32>
      %32 = arith.addf %29, %31 : vector<8x32xf32>
      %c0_30 = arith.constant 0 : index
      %c0_31 = arith.constant 0 : index
      %33 = vector.load %arg5[%c0_30, %c0_31] : memref<32x32xbf16, #tpu.memory_space<vmem>>, vector<32x32xbf16>
      %cst_32 = arith.constant dense<0.000000e+00> : vector<8x32xf32>
      %34 = tpu.matmul %27, %33, %cst_32 {dimension_numbers = #tpu.dot_dimension_numbers<[1], [0], [0], [1], [0, 0, 1, 1], [], []>} : vector<8x32xbf16>, vector<32x32xbf16>, vector<8x32xf32> -> vector<8x32xf32>
      %c0_33 = arith.constant 0 : index
      %c0_34 = arith.constant 0 : index
      %35 = vector.load %arg6[%c0_33, %c0_34] : memref<1x32xf32, #tpu.memory_space<vmem>>, vector<1x32xf32>
      %36 = vector.broadcast %35 : vector<1x32xf32> to vector<8x32xf32>
      %37 = arith.addf %34, %36 : vector<8x32xf32>
      %c0_35 = arith.constant 0 : index
      %c0_36 = arith.constant 0 : index
      %38 = vector.load %arg7[%c0_35, %c0_36] : memref<32x32xbf16, #tpu.memory_space<vmem>>, vector<32x32xbf16>
      %cst_37 = arith.constant dense<0.000000e+00> : vector<8x32xf32>
      %39 = tpu.matmul %27, %38, %cst_37 {dimension_numbers = #tpu.dot_dimension_numbers<[1], [0], [0], [1], [0, 0, 1, 1], [], []>} : vector<8x32xbf16>, vector<32x32xbf16>, vector<8x32xf32> -> vector<8x32xf32>
      %c0_38 = arith.constant 0 : index
      %c0_39 = arith.constant 0 : index
      %40 = vector.load %arg8[%c0_38, %c0_39] : memref<1x32xf32, #tpu.memory_space<vmem>>, vector<1x32xf32>
      %41 = vector.broadcast %40 : vector<1x32xf32> to vector<8x32xf32>
      %42 = arith.addf %39, %41 : vector<8x32xf32>
      %43 = vector.extract_strided_slice %32 {offsets = [0, 0], sizes = [8, 8], strides = [1, 1]} : vector<8x32xf32> to vector<8x8xf32>
      %44 = arith.truncf %43 : vector<8x8xf32> to vector<8x8xbf16>
      %c0_40 = arith.constant 0 : index
      %c0_41 = arith.constant 0 : index
      %c0_42 = arith.constant 0 : index
      %45 = vector.load %arg18[%c0_40, %c0_41, %c0_42] : memref<4x8x8xbf16, #tpu.memory_space<vmem>>, vector<1x8x8xbf16>
      %46 = vector.shape_cast %45 : vector<1x8x8xbf16> to vector<8x8xbf16>
      %47 = vector.shape_cast %44 : vector<8x8xbf16> to vector<1x8x8xbf16>
      tpu.vector_store %arg18[%c0_40, %c0_41, %c0_42], %47 {strides = array<i32>} : memref<4x8x8xbf16, #tpu.memory_space<vmem>>, vector<1x8x8xbf16>,
      %48 = vector.extract_strided_slice %37 {offsets = [0, 0], sizes = [8, 8], strides = [1, 1]} : vector<8x32xf32> to vector<8x8xf32>
      %49 = arith.truncf %48 : vector<8x8xf32> to vector<8x8xbf16>
      %c0_43 = arith.constant 0 : index
      %c0_44 = arith.constant 0 : index
      %c0_45 = arith.constant 0 : index
      %50 = vector.load %arg19[%c0_43, %c0_44, %c0_45] : memref<4x8x8xbf16, #tpu.memory_space<vmem>>, vector<1x8x8xbf16>
      %51 = vector.shape_cast %50 : vector<1x8x8xbf16> to vector<8x8xbf16>
      %52 = vector.shape_cast %49 : vector<8x8xbf16> to vector<1x8x8xbf16>
      tpu.vector_store %arg19[%c0_43, %c0_44, %c0_45], %52 {strides = array<i32>} : memref<4x8x8xbf16, #tpu.memory_space<vmem>>, vector<1x8x8xbf16>,
      %53 = vector.extract_strided_slice %42 {offsets = [0, 0], sizes = [8, 8], strides = [1, 1]} : vector<8x32xf32> to vector<8x8xf32>
      %54 = arith.truncf %53 : vector<8x8xf32> to vector<8x8xbf16>
      %c0_46 = arith.constant 0 : index
      %c0_47 = arith.constant 0 : index
      %c0_48 = arith.constant 0 : index
      %55 = vector.load %arg20[%c0_46, %c0_47, %c0_48] : memref<4x8x8xbf16, #tpu.memory_space<vmem>>, vector<1x8x8xbf16>
      %56 = vector.shape_cast %55 : vector<1x8x8xbf16> to vector<8x8xbf16>
      %57 = vector.shape_cast %54 : vector<8x8xbf16> to vector<1x8x8xbf16>
      tpu.vector_store %arg20[%c0_46, %c0_47, %c0_48], %57 {strides = array<i32>} : memref<4x8x8xbf16, #tpu.memory_space<vmem>>, vector<1x8x8xbf16>,
      %58 = vector.extract_strided_slice %32 {offsets = [0, 8], sizes = [8, 8], strides = [1, 1]} : vector<8x32xf32> to vector<8x8xf32>
      %59 = arith.truncf %58 : vector<8x8xf32> to vector<8x8xbf16>
      %c1 = arith.constant 1 : index
      %c0_49 = arith.constant 0 : index
      %c0_50 = arith.constant 0 : index
      %60 = vector.load %arg18[%c1, %c0_49, %c0_50] : memref<4x8x8xbf16, #tpu.memory_space<vmem>>, vector<1x8x8xbf16>
      %61 = vector.shape_cast %60 : vector<1x8x8xbf16> to vector<8x8xbf16>
      %62 = vector.shape_cast %59 : vector<8x8xbf16> to vector<1x8x8xbf16>
      tpu.vector_store %arg18[%c1, %c0_49, %c0_50], %62 {strides = array<i32>} : memref<4x8x8xbf16, #tpu.memory_space<vmem>>, vector<1x8x8xbf16>,
      %63 = vector.extract_strided_slice %37 {offsets = [0, 8], sizes = [8, 8], strides = [1, 1]} : vector<8x32xf32> to vector<8x8xf32>
      %64 = arith.truncf %63 : vector<8x8xf32> to vector<8x8xbf16>
      %c1_51 = arith.constant 1 : index
      %c0_52 = arith.constant 0 : index
      %c0_53 = arith.constant 0 : index
      %65 = vector.load %arg19[%c1_51, %c0_52, %c0_53] : memref<4x8x8xbf16, #tpu.memory_space<vmem>>, vector<1x8x8xbf16>
      %66 = vector.shape_cast %65 : vector<1x8x8xbf16> to vector<8x8xbf16>
      %67 = vector.shape_cast %64 : vector<8x8xbf16> to vector<1x8x8xbf16>
      tpu.vector_store %arg19[%c1_51, %c0_52, %c0_53], %67 {strides = array<i32>} : memref<4x8x8xbf16, #tpu.memory_space<vmem>>, vector<1x8x8xbf16>,
      %68 = vector.extract_strided_slice %42 {offsets = [0, 8], sizes = [8, 8], strides = [1, 1]} : vector<8x32xf32> to vector<8x8xf32>
      %69 = arith.truncf %68 : vector<8x8xf32> to vector<8x8xbf16>
      %c1_54 = arith.constant 1 : index
      %c0_55 = arith.constant 0 : index
      %c0_56 = arith.constant 0 : index
      %70 = vector.load %arg20[%c1_54, %c0_55, %c0_56] : memref<4x8x8xbf16, #tpu.memory_space<vmem>>, vector<1x8x8xbf16>
      %71 = vector.shape_cast %70 : vector<1x8x8xbf16> to vector<8x8xbf16>
      %72 = vector.shape_cast %69 : vector<8x8xbf16> to vector<1x8x8xbf16>
      tpu.vector_store %arg20[%c1_54, %c0_55, %c0_56], %72 {strides = array<i32>} : memref<4x8x8xbf16, #tpu.memory_space<vmem>>, vector<1x8x8xbf16>,
      %73 = vector.extract_strided_slice %32 {offsets = [0, 16], sizes = [8, 8], strides = [1, 1]} : vector<8x32xf32> to vector<8x8xf32>
      %74 = arith.truncf %73 : vector<8x8xf32> to vector<8x8xbf16>
      %c2 = arith.constant 2 : index
      %c0_57 = arith.constant 0 : index
      %c0_58 = arith.constant 0 : index
      %75 = vector.load %arg18[%c2, %c0_57, %c0_58] : memref<4x8x8xbf16, #tpu.memory_space<vmem>>, vector<1x8x8xbf16>
      %76 = vector.shape_cast %75 : vector<1x8x8xbf16> to vector<8x8xbf16>
      %77 = vector.shape_cast %74 : vector<8x8xbf16> to vector<1x8x8xbf16>
      tpu.vector_store %arg18[%c2, %c0_57, %c0_58], %77 {strides = array<i32>} : memref<4x8x8xbf16, #tpu.memory_space<vmem>>, vector<1x8x8xbf16>,
      %78 = vector.extract_strided_slice %37 {offsets = [0, 16], sizes = [8, 8], strides = [1, 1]} : vector<8x32xf32> to vector<8x8xf32>
      %79 = arith.truncf %78 : vector<8x8xf32> to vector<8x8xbf16>
      %c2_59 = arith.constant 2 : index
      %c0_60 = arith.constant 0 : index
      %c0_61 = arith.constant 0 : index
      %80 = vector.load %arg19[%c2_59, %c0_60, %c0_61] : memref<4x8x8xbf16, #tpu.memory_space<vmem>>, vector<1x8x8xbf16>
      %81 = vector.shape_cast %80 : vector<1x8x8xbf16> to vector<8x8xbf16>
      %82 = vector.shape_cast %79 : vector<8x8xbf16> to vector<1x8x8xbf16>
      tpu.vector_store %arg19[%c2_59, %c0_60, %c0_61], %82 {strides = array<i32>} : memref<4x8x8xbf16, #tpu.memory_space<vmem>>, vector<1x8x8xbf16>,
      %83 = vector.extract_strided_slice %42 {offsets = [0, 16], sizes = [8, 8], strides = [1, 1]} : vector<8x32xf32> to vector<8x8xf32>
      %84 = arith.truncf %83 : vector<8x8xf32> to vector<8x8xbf16>
      %c2_62 = arith.constant 2 : index
      %c0_63 = arith.constant 0 : index
      %c0_64 = arith.constant 0 : index
      %85 = vector.load %arg20[%c2_62, %c0_63, %c0_64] : memref<4x8x8xbf16, #tpu.memory_space<vmem>>, vector<1x8x8xbf16>
      %86 = vector.shape_cast %85 : vector<1x8x8xbf16> to vector<8x8xbf16>
      %87 = vector.shape_cast %84 : vector<8x8xbf16> to vector<1x8x8xbf16>
      tpu.vector_store %arg20[%c2_62, %c0_63, %c0_64], %87 {strides = array<i32>} : memref<4x8x8xbf16, #tpu.memory_space<vmem>>, vector<1x8x8xbf16>,
      %88 = vector.extract_strided_slice %32 {offsets = [0, 24], sizes = [8, 8], strides = [1, 1]} : vector<8x32xf32> to vector<8x8xf32>
      %89 = arith.truncf %88 : vector<8x8xf32> to vector<8x8xbf16>
      %c3 = arith.constant 3 : index
      %c0_65 = arith.constant 0 : index
      %c0_66 = arith.constant 0 : index
      %90 = vector.load %arg18[%c3, %c0_65, %c0_66] : memref<4x8x8xbf16, #tpu.memory_space<vmem>>, vector<1x8x8xbf16>
      %91 = vector.shape_cast %90 : vector<1x8x8xbf16> to vector<8x8xbf16>
      %92 = vector.shape_cast %89 : vector<8x8xbf16> to vector<1x8x8xbf16>
      tpu.vector_store %arg18[%c3, %c0_65, %c0_66], %92 {strides = array<i32>} : memref<4x8x8xbf16, #tpu.memory_space<vmem>>, vector<1x8x8xbf16>,
      %93 = vector.extract_strided_slice %37 {offsets = [0, 24], sizes = [8, 8], strides = [1, 1]} : vector<8x32xf32> to vector<8x8xf32>
      %94 = arith.truncf %93 : vector<8x8xf32> to vector<8x8xbf16>
      %c3_67 = arith.constant 3 : index
      %c0_68 = arith.constant 0 : index
      %c0_69 = arith.constant 0 : index
      %95 = vector.load %arg19[%c3_67, %c0_68, %c0_69] : memref<4x8x8xbf16, #tpu.memory_space<vmem>>, vector<1x8x8xbf16>
      %96 = vector.shape_cast %95 : vector<1x8x8xbf16> to vector<8x8xbf16>
      %97 = vector.shape_cast %94 : vector<8x8xbf16> to vector<1x8x8xbf16>
      tpu.vector_store %arg19[%c3_67, %c0_68, %c0_69], %97 {strides = array<i32>} : memref<4x8x8xbf16, #tpu.memory_space<vmem>>, vector<1x8x8xbf16>,
      %98 = vector.extract_strided_slice %42 {offsets = [0, 24], sizes = [8, 8], strides = [1, 1]} : vector<8x32xf32> to vector<8x8xf32>
      %99 = arith.truncf %98 : vector<8x8xf32> to vector<8x8xbf16>
      %c3_70 = arith.constant 3 : index
      %c0_71 = arith.constant 0 : index
      %c0_72 = arith.constant 0 : index
      %100 = vector.load %arg20[%c3_70, %c0_71, %c0_72] : memref<4x8x8xbf16, #tpu.memory_space<vmem>>, vector<1x8x8xbf16>
      %101 = vector.shape_cast %100 : vector<1x8x8xbf16> to vector<8x8xbf16>
      %102 = vector.shape_cast %99 : vector<8x8xbf16> to vector<1x8x8xbf16>
      tpu.vector_store %arg20[%c3_70, %c0_71, %c0_72], %102 {strides = array<i32>} : memref<4x8x8xbf16, #tpu.memory_space<vmem>>, vector<1x8x8xbf16>,
      %cst_73 = arith.constant 0.000000e+00 : f32
      %103 = vector.broadcast %cst_73 : f32 to vector<8x32xf32>
      %c0_i32_74 = arith.constant 0 : i32
      %c2_i32 = arith.constant 2 : i32
      %104 = arith.addi %c0_i32_74, %c2_i32 : i32
      %c1_i32_75 = arith.constant 1 : i32
      %105 = scf.for %arg23 = %c0_i32_74 to %104 step %c1_i32_75 iter_args(%arg24 = %103) -> (vector<8x32xf32>)  : i32 {
        %c2_i32_90 = arith.constant 2 : i32
        %137 = arith.muli %arg23, %c2_i32_90 : i32
        %138 = tpu.assume_multiple %137, 2 : i32
        %139 = arith.index_cast %138 : i32 to index
        %c0_91 = arith.constant 0 : index
        %c0_92 = arith.constant 0 : index
        %140 = vector.load %arg18[%139, %c0_91, %c0_92] : memref<4x8x8xbf16, #tpu.memory_space<vmem>>, vector<2x8x8xbf16>
        %141 = arith.index_cast %138 : i32 to index
        %c0_93 = arith.constant 0 : index
        %c0_94 = arith.constant 0 : index
        %142 = vector.load %arg19[%141, %c0_93, %c0_94] : memref<4x8x8xbf16, #tpu.memory_space<vmem>>, vector<2x8x8xbf16>
        %143 = arith.index_cast %138 : i32 to index
        %c0_95 = arith.constant 0 : index
        %c0_96 = arith.constant 0 : index
        %144 = vector.load %arg20[%143, %c0_95, %c0_96] : memref<4x8x8xbf16, #tpu.memory_space<vmem>>, vector<2x8x8xbf16>
        %145 = arith.index_cast %138 : i32 to index
        %c0_97 = arith.constant 0 : index
        %c0_98 = arith.constant 0 : index
        %146 = vector.load %arg9[%145, %c0_97, %c0_98] : memref<4x8x32xbf16, #tpu.memory_space<vmem>>, vector<2x8x32xbf16>
        "tpu.trace_start"() <{level = 10 : i32, message = "hqe,hke->hqk"}> : () -> ()
        %cst_99 = arith.constant dense<0.000000e+00> : vector<2x8x8xf32>
        %147 = tpu.matmul %140, %142, %cst_99 {dimension_numbers = #tpu.dot_dimension_numbers<[2], [2], [1], [1], [0, 0, 0, 1, 1, 1], [0], [0]>} : vector<2x8x8xbf16>, vector<2x8x8xbf16>, vector<2x8x8xf32> -> vector<2x8x8xf32>
        "tpu.trace_stop"() : () -> ()
        %cst_100 = arith.constant dense<0xFF800000> : vector<2x8xf32>
        %148 = vector.multi_reduction <maximumf>, %147, %cst_100 [2] : vector<2x8x8xf32> to vector<2x8xf32>
        %149 = vector.shape_cast %148 : vector<2x8xf32> to vector<2x8x1xf32>
        %150 = vector.broadcast %149 : vector<2x8x1xf32> to vector<2x8x8xf32>
        %151 = arith.subf %147, %150 : vector<2x8x8xf32>
        %152 = math.exp %151 : vector<2x8x8xf32>
        %cst_101 = arith.constant dense<0.000000e+00> : vector<2x8xf32>
        %153 = vector.multi_reduction <add>, %152, %cst_101 [2] : vector<2x8x8xf32> to vector<2x8xf32>
        %154 = vector.shape_cast %153 : vector<2x8xf32> to vector<2x8x1xf32>
        %155 = tpu.reciprocal %154 {approx = true} : vector<2x8x1xf32> -> vector<2x8x1xf32>
        %156 = vector.broadcast %155 : vector<2x8x1xf32> to vector<2x8x8xf32>
        %157 = arith.mulf %152, %156 : vector<2x8x8xf32>
        %158 = arith.truncf %157 : vector<2x8x8xf32> to vector<2x8x8xbf16>
        "tpu.trace_start"() <{level = 10 : i32, message = "hqk,hke->hqe"}> : () -> ()
        %cst_102 = arith.constant dense<0.000000e+00> : vector<2x8x8xf32>
        %159 = tpu.matmul %158, %144, %cst_102 {dimension_numbers = #tpu.dot_dimension_numbers<[2], [1], [1], [2], [0, 0, 0, 1, 1, 2], [0], [0]>} : vector<2x8x8xbf16>, vector<2x8x8xbf16>, vector<2x8x8xf32> -> vector<2x8x8xf32>
        "tpu.trace_stop"() : () -> ()
        %160 = arith.truncf %159 : vector<2x8x8xf32> to vector<2x8x8xbf16>
        "tpu.trace_start"() <{level = 10 : i32, message = "hse,hed->hsd"}> : () -> ()
        %cst_103 = arith.constant dense<0.000000e+00> : vector<2x8x32xf32>
        %161 = tpu.matmul %160, %146, %cst_103 {dimension_numbers = #tpu.dot_dimension_numbers<[2], [1], [1], [2], [0, 0, 0, 1, 1, 2], [0], [0]>} : vector<2x8x8xbf16>, vector<2x8x32xbf16>, vector<2x8x32xf32> -> vector<2x8x32xf32>
        "tpu.trace_stop"() : () -> ()
        %cst_104 = arith.constant dense<0.000000e+00> : vector<8x32xf32>
        %162 = vector.multi_reduction <add>, %161, %cst_104 [0] : vector<2x8x32xf32> to vector<8x32xf32>
        %163 = arith.addf %arg24, %162 : vector<8x32xf32>
        scf.yield %163 : vector<8x32xf32>
      }
      %c2_i32_76 = arith.constant 2 : i32
      %c0_77 = arith.constant 0 : index
      %c0_78 = arith.constant 0 : index
      %106 = vector.load %arg10[%c0_77, %c0_78] : memref<1x32xf32, #tpu.memory_space<vmem>>, vector<1x32xf32>
      %107 = vector.broadcast %106 : vector<1x32xf32> to vector<8x32xf32>
      %108 = arith.addf %105, %107 : vector<8x32xf32>
      %109 = arith.addf %108, %24 : vector<8x32xf32>
      %cst_79 = arith.constant dense<0.000000e+00> : vector<8xf32>
      %110 = vector.multi_reduction <add>, %109, %cst_79 [1] : vector<8x32xf32> to vector<8xf32>
      %111 = vector.shape_cast %110 : vector<8xf32> to vector<8x1xf32>
      %cst_80 = arith.constant 3.200000e+01 : f32
      %112 = vector.broadcast %cst_80 : f32 to vector<8x1xf32>
      %113 = arith.divf %111, %112 : vector<8x1xf32>
      %114 = arith.mulf %109, %109 : vector<8x32xf32>
      %cst_81 = arith.constant dense<0.000000e+00> : vector<8xf32>
      %115 = vector.multi_reduction <add>, %114, %cst_81 [1] : vector<8x32xf32> to vector<8xf32>
      %116 = vector.shape_cast %115 : vector<8xf32> to vector<8x1xf32>
      %cst_82 = arith.constant 3.200000e+01 : f32
      %117 = vector.broadcast %cst_82 : f32 to vector<8x1xf32>
      %118 = arith.divf %116, %117 : vector<8x1xf32>
      %119 = arith.mulf %113, %113 : vector<8x1xf32>
      %120 = arith.subf %118, %119 : vector<8x1xf32>
      %cst_83 = arith.constant 0.000000e+00 : f32
      %121 = vector.broadcast %cst_83 : f32 to vector<8x1xf32>
      %122 = arith.maximumf %120, %121 : vector<8x1xf32>
      %123 = vector.broadcast %113 : vector<8x1xf32> to vector<8x32xf32>
      %124 = arith.subf %109, %123 : vector<8x32xf32>
      %cst_84 = arith.constant 9.99999974E-6 : f32
      %125 = vector.broadcast %cst_84 : f32 to vector<8x1xf32>
      %126 = arith.addf %122, %125 : vector<8x1xf32>
      %127 = math.rsqrt %126 : vector<8x1xf32>
      %128 = vector.broadcast %127 : vector<8x1xf32> to vector<8x32xf32>
      %129 = arith.mulf %124, %128 : vector<8x32xf32>
      %130 = vector.broadcast %0 : vector<1x32xf32> to vector<8x32xf32>
      %131 = arith.mulf %129, %130 : vector<8x32xf32>
      %132 = vector.broadcast %1 : vector<1x32xf32> to vector<8x32xf32>
      %133 = arith.addf %131, %132 : vector<8x32xf32>
      %c0_85 = arith.constant 0 : index
      %c0_86 = arith.constant 0 : index
      %134 = vector.load %arg21[%c0_85, %c0_86] : memref<8x32xf32, #tpu.memory_space<vmem>>, vector<8x32xf32>
      tpu.vector_store %arg21[%c0_85, %c0_86], %133 {strides = array<i32>} : memref<8x32xf32, #tpu.memory_space<vmem>>, vector<8x32xf32>,
      %cst_87 = arith.constant 0.000000e+00 : f32
      %135 = vector.broadcast %cst_87 : f32 to vector<8x32xf32>
      %c0_88 = arith.constant 0 : index
      %c0_89 = arith.constant 0 : index
      %136 = vector.load %arg22[%c0_88, %c0_89] : memref<8x32xf32, #tpu.memory_space<vmem>>, vector<8x32xf32>
      tpu.vector_store %arg22[%c0_88, %c0_89], %135 {strides = array<i32>} : memref<8x32xf32, #tpu.memory_space<vmem>>, vector<8x32xf32>,
    } else {
    }
    %c0_4 = arith.constant 0 : index
    %c0_5 = arith.constant 0 : index
    %5 = vector.load %arg21[%c0_4, %c0_5] : memref<8x32xf32, #tpu.memory_space<vmem>>, vector<8x32xf32>
    %6 = arith.truncf %5 : vector<8x32xf32> to vector<8x32xbf16>
    %c0_6 = arith.constant 0 : index
    %c0_7 = arith.constant 0 : index
    %7 = vector.load %arg11[%c0_6, %c0_7] : memref<32x128xbf16, #tpu.memory_space<vmem>>, vector<32x128xbf16>
    %cst = arith.constant dense<0.000000e+00> : vector<8x128xf32>
    %8 = tpu.matmul %6, %7, %cst {dimension_numbers = #tpu.dot_dimension_numbers<[1], [0], [0], [1], [0, 0, 1, 1], [], []>} : vector<8x32xbf16>, vector<32x128xbf16>, vector<8x128xf32> -> vector<8x128xf32>
    %c0_8 = arith.constant 0 : index
    %c0_9 = arith.constant 0 : index
    %9 = vector.load %arg12[%c0_8, %c0_9] : memref<1x128xf32, #tpu.memory_space<vmem>>, vector<1x128xf32>
    %10 = vector.broadcast %9 : vector<1x128xf32> to vector<8x128xf32>
    %11 = arith.addf %8, %10 : vector<8x128xf32>
    %cst_10 = arith.constant 0.000000e+00 : f32
    %12 = vector.broadcast %cst_10 : f32 to vector<8x128xf32>
    %13 = arith.maximumf %11, %12 : vector<8x128xf32>
    %c0_11 = arith.constant 0 : index
    %c0_12 = arith.constant 0 : index
    %14 = vector.load %arg22[%c0_11, %c0_12] : memref<8x32xf32, #tpu.memory_space<vmem>>, vector<8x32xf32>
    %15 = arith.truncf %13 : vector<8x128xf32> to vector<8x128xbf16>
    %c0_13 = arith.constant 0 : index
    %c0_14 = arith.constant 0 : index
    %16 = vector.load %arg13[%c0_13, %c0_14] : memref<128x32xbf16, #tpu.memory_space<vmem>>, vector<128x32xbf16>
    %cst_15 = arith.constant dense<0.000000e+00> : vector<8x32xf32>
    %17 = tpu.matmul %15, %16, %cst_15 {dimension_numbers = #tpu.dot_dimension_numbers<[1], [0], [0], [1], [0, 0, 1, 1], [], []>} : vector<8x128xbf16>, vector<128x32xbf16>, vector<8x32xf32> -> vector<8x32xf32>
    %18 = arith.addf %14, %17 : vector<8x32xf32>
    %c0_16 = arith.constant 0 : index
    %c0_17 = arith.constant 0 : index
    %19 = vector.load %arg22[%c0_16, %c0_17] : memref<8x32xf32, #tpu.memory_space<vmem>>, vector<8x32xf32>
    tpu.vector_store %arg22[%c0_16, %c0_17], %18 {strides = array<i32>} : memref<8x32xf32, #tpu.memory_space<vmem>>, vector<8x32xf32>,
    %c1_i32 = arith.constant 1 : i32
    %20 = arith.cmpi eq, %arg1, %c1_i32 : i32
    %21 = arith.extui %20 : i1 to i32
    %c0_i32_18 = arith.constant 0 : i32
    %22 = arith.cmpi ne, %21, %c0_i32_18 : i32
    scf.if %22 {
      %c0_19 = arith.constant 0 : index
      %c0_20 = arith.constant 0 : index
      %23 = vector.load %arg22[%c0_19, %c0_20] : memref<8x32xf32, #tpu.memory_space<vmem>>, vector<8x32xf32>
      %c0_21 = arith.constant 0 : index
      %c0_22 = arith.constant 0 : index
      %24 = vector.load %arg14[%c0_21, %c0_22] : memref<1x32xf32, #tpu.memory_space<vmem>>, vector<1x32xf32>
      %25 = vector.broadcast %24 : vector<1x32xf32> to vector<8x32xf32>
      %26 = arith.addf %23, %25 : vector<8x32xf32>
      %c0_23 = arith.constant 0 : index
      %c0_24 = arith.constant 0 : index
      %27 = vector.load %arg21[%c0_23, %c0_24] : memref<8x32xf32, #tpu.memory_space<vmem>>, vector<8x32xf32>
      %28 = arith.addf %26, %27 : vector<8x32xf32>
      %cst_25 = arith.constant dense<0.000000e+00> : vector<8xf32>
      %29 = vector.multi_reduction <add>, %28, %cst_25 [1] : vector<8x32xf32> to vector<8xf32>
      %30 = vector.shape_cast %29 : vector<8xf32> to vector<8x1xf32>
      %cst_26 = arith.constant 3.200000e+01 : f32
      %31 = vector.broadcast %cst_26 : f32 to vector<8x1xf32>
      %32 = arith.divf %30, %31 : vector<8x1xf32>
      %33 = arith.mulf %28, %28 : vector<8x32xf32>
      %cst_27 = arith.constant dense<0.000000e+00> : vector<8xf32>
      %34 = vector.multi_reduction <add>, %33, %cst_27 [1] : vector<8x32xf32> to vector<8xf32>
      %35 = vector.shape_cast %34 : vector<8xf32> to vector<8x1xf32>
      %cst_28 = arith.constant 3.200000e+01 : f32
      %36 = vector.broadcast %cst_28 : f32 to vector<8x1xf32>
      %37 = arith.divf %35, %36 : vector<8x1xf32>
      %38 = arith.mulf %32, %32 : vector<8x1xf32>
      %39 = arith.subf %37, %38 : vector<8x1xf32>
      %cst_29 = arith.constant 0.000000e+00 : f32
      %40 = vector.broadcast %cst_29 : f32 to vector<8x1xf32>
      %41 = arith.maximumf %39, %40 : vector<8x1xf32>
      %42 = vector.broadcast %32 : vector<8x1xf32> to vector<8x32xf32>
      %43 = arith.subf %28, %42 : vector<8x32xf32>
      %cst_30 = arith.constant 9.99999974E-6 : f32
      %44 = vector.broadcast %cst_30 : f32 to vector<8x1xf32>
      %45 = arith.addf %41, %44 : vector<8x1xf32>
      %46 = math.rsqrt %45 : vector<8x1xf32>
      %47 = vector.broadcast %46 : vector<8x1xf32> to vector<8x32xf32>
      %48 = arith.mulf %43, %47 : vector<8x32xf32>
      %49 = vector.broadcast %0 : vector<1x32xf32> to vector<8x32xf32>
      %50 = arith.mulf %48, %49 : vector<8x32xf32>
      %51 = vector.broadcast %1 : vector<1x32xf32> to vector<8x32xf32>
      %52 = arith.addf %50, %51 : vector<8x32xf32>
      %c0_31 = arith.constant 0 : index
      %c0_32 = arith.constant 0 : index
      %c0_33 = arith.constant 0 : index
      %53 = vector.load %arg17[%c0_31, %c0_32, %c0_33] : memref<1x8x32xf32, #tpu.memory_space<vmem>>, vector<1x8x32xf32>
      %54 = vector.shape_cast %53 : vector<1x8x32xf32> to vector<8x32xf32>
      %55 = vector.shape_cast %52 : vector<8x32xf32> to vector<1x8x32xf32>
      tpu.vector_store %arg17[%c0_31, %c0_32, %c0_33], %55 {strides = array<i32>} : memref<1x8x32xf32, #tpu.memory_space<vmem>>, vector<1x8x32xf32>,
    } else {
    }
    return
  }
  func.func @transform_0(%arg0: i32, %arg1: i32) -> (i32, i32, i32) {
    %c0_i32 = arith.constant 0 : i32
    %c0_i32_0 = arith.constant 0 : i32
    %c0_i32_1 = arith.constant 0 : i32
    return %arg0, %c0_i32, %c0_i32_0 : i32, i32, i32
  }
  func.func @transform_1(%arg0: i32, %arg1: i32) -> (i32, i32) {
    %c0_i32 = arith.constant 0 : i32
    %c0_i32_0 = arith.constant 0 : i32
    %c0_i32_1 = arith.constant 0 : i32
    return %c0_i32, %c0_i32_0 : i32, i32
  }
  func.func @transform_2(%arg0: i32, %arg1: i32) -> (i32, i32) {
    %c0_i32 = arith.constant 0 : i32
    %c0_i32_0 = arith.constant 0 : i32
    %c0_i32_1 = arith.constant 0 : i32
    return %c0_i32, %c0_i32_0 : i32, i32
  }
  func.func @transform_3(%arg0: i32, %arg1: i32) -> (i32, i32) {
    %c0_i32 = arith.constant 0 : i32
    %c0_i32_0 = arith.constant 0 : i32
    %c0_i32_1 = arith.constant 0 : i32
    return %c0_i32, %c0_i32_0 : i32, i32
  }
  func.func @transform_4(%arg0: i32, %arg1: i32) -> (i32, i32) {
    %c0_i32 = arith.constant 0 : i32
    %c0_i32_0 = arith.constant 0 : i32
    %c0_i32_1 = arith.constant 0 : i32
    return %c0_i32, %c0_i32_0 : i32, i32
  }
  func.func @transform_5(%arg0: i32, %arg1: i32) -> (i32, i32) {
    %c0_i32 = arith.constant 0 : i32
    %c0_i32_0 = arith.constant 0 : i32
    %c0_i32_1 = arith.constant 0 : i32
    return %c0_i32, %c0_i32_0 : i32, i32
  }
  func.func @transform_6(%arg0: i32, %arg1: i32) -> (i32, i32) {
    %c0_i32 = arith.constant 0 : i32
    %c0_i32_0 = arith.constant 0 : i32
    %c0_i32_1 = arith.constant 0 : i32
    return %c0_i32, %c0_i32_0 : i32, i32
  }
  func.func @transform_7(%arg0: i32, %arg1: i32) -> (i32, i32, i32) {
    %c0_i32 = arith.constant 0 : i32
    %c0_i32_0 = arith.constant 0 : i32
    %c0_i32_1 = arith.constant 0 : i32
    %c0_i32_2 = arith.constant 0 : i32
    return %c0_i32, %c0_i32_0, %c0_i32_1 : i32, i32, i32
  }
  func.func @transform_8(%arg0: i32, %arg1: i32) -> (i32, i32) {
    %c0_i32 = arith.constant 0 : i32
    %c0_i32_0 = arith.constant 0 : i32
    %c0_i32_1 = arith.constant 0 : i32
    return %c0_i32, %c0_i32_0 : i32, i32
  }
  func.func @transform_9(%arg0: i32, %arg1: i32) -> (i32, i32) {
    %c0_i32 = arith.constant 0 : i32
    %c0_i32_0 = arith.constant 0 : i32
    return %c0_i32, %arg1 : i32, i32
  }
  func.func @transform_10(%arg0: i32, %arg1: i32) -> (i32, i32) {
    %c0_i32 = arith.constant 0 : i32
    %c0_i32_0 = arith.constant 0 : i32
    return %c0_i32, %arg1 : i32, i32
  }
  func.func @transform_11(%arg0: i32, %arg1: i32) -> (i32, i32) {
    %c0_i32 = arith.constant 0 : i32
    %c0_i32_0 = arith.constant 0 : i32
    return %arg1, %c0_i32 : i32, i32
  }
  func.func @transform_12(%arg0: i32, %arg1: i32) -> (i32, i32) {
    %c0_i32 = arith.constant 0 : i32
    %c0_i32_0 = arith.constant 0 : i32
    %c0_i32_1 = arith.constant 0 : i32
    return %c0_i32, %c0_i32_0 : i32, i32
  }
  func.func @transform_13(%arg0: i32, %arg1: i32) -> (i32, i32) {
    %c0_i32 = arith.constant 0 : i32
    %c0_i32_0 = arith.constant 0 : i32
    %c0_i32_1 = arith.constant 0 : i32
    return %c0_i32, %c0_i32_0 : i32, i32
  }
  func.func @transform_14(%arg0: i32, %arg1: i32) -> (i32, i32) {
    %c0_i32 = arith.constant 0 : i32
    %c0_i32_0 = arith.constant 0 : i32
    %c0_i32_1 = arith.constant 0 : i32
    return %c0_i32, %c0_i32_0 : i32, i32
  }
  func.func @transform_15(%arg0: i32, %arg1: i32) -> (i32, i32, i32) {
    %c0_i32 = arith.constant 0 : i32
    %c0_i32_0 = arith.constant 0 : i32
    %c0_i32_1 = arith.constant 0 : i32
    return %arg0, %c0_i32, %c0_i32_0 : i32, i32, i32
  }
}

</mosaic_0001>

<bundles_post_ra>
// kernel: tpu_custom_call.1
= control target key start
LH: loop header
LB: loop body
LE: loop exit
PB: predicated region body
PF: predicated region fallthrough
CT: control target
= control target key end

     0   :  { %s2511_s0 = inlined_call_operand.vmem [shape: f32[2,8,32], index: 0, kind: input, shape index: {}]   ;;  %s2512_s1 = inlined_call_operand.vmem [shape: bf16[32,32], index: 1, kind: input, shape index: {}]   ;;  %s2513_s2 = inlined_call_operand.vmem [shape: f32[1,32], index: 2, kind: input, shape index: {}]   ;;  %s2514_s3 = inlined_call_operand.vmem [shape: bf16[32,32], index: 3, kind: input, shape index: {}]   ;;  %s2515_s4 = inlined_call_operand.vmem [shape: f32[1,32], index: 4, kind: input, shape index: {}]   ;;  %s2516_s5 = inlined_call_operand.vmem [shape: bf16[32,32], index: 5, kind: input, shape index: {}]   ;;  %s2517_s6 = inlined_call_operand.vmem [shape: f32[1,32], index: 6, kind: input, shape index: {}]   ;;  %s2518_s7 = inlined_call_operand.vmem [shape: bf16[4,8,32], index: 7, kind: input, shape index: {}]   ;;  %s2519_s8 = inlined_call_operand.vmem [shape: f32[1,32], index: 8, kind: input, shape index: {}]   ;;  %s2520_s9 = inlined_call_operand.vmem [shape: bf16[32,256], index: 9, kind: input, shape index: {}]   ;;  %s2521_s10 = inlined_call_operand.vmem [shape: f32[1,256], index: 10, kind: input, shape index: {}]   ;;  %s2522_s11 = inlined_call_operand.vmem [shape: bf16[256,32], index: 11, kind: input, shape index: {}]   ;;  %s2523_s12 = inlined_call_operand.vmem [shape: f32[1,32], index: 12, kind: input, shape index: {}]   ;;  %s2524_s13 = inlined_call_operand.vmem [shape: f32[1,32], index: 13, kind: input, shape index: {}]   ;;  %s2525_s14 = inlined_call_operand.vmem [shape: f32[1,32], index: 14, kind: input, shape index: {}]   ;;  %s2526_s15 = inlined_call_operand.hbm [shape: f32[2,8,32], index: 15, kind: output, shape index: {}]  }
   0x1   :  { %2537 = sst [smem:[#allocation21_spill]] %s2515_s4 }
   0x2   :  { %2538 = sst [smem:[#allocation22_spill]] %s2517_s6 }
   0x3   :  { %2539 = sst [smem:[#allocation23_spill]] %s2518_s7 }
   0x4   :  { %2540 = sst [smem:[#allocation24_spill]] %s2519_s8 }
   0x5   :  { %2541 = sst [smem:[#allocation25_spill]] %s2520_s9 }
   0x6   :  { %2542 = sst [smem:[#allocation26_spill]] %s2523_s12 }
   0x7   :  { %2543 = sst [smem:[#allocation27_spill]] %s2524_s13 }
   0x8   :  { %2544 = sst [smem:[#allocation28_spill]] %s2525_s14 }
   0x9   :  { %2545 = sst [smem:[#allocation29_spill]] %s2526_s15 }
   0xa   :  { %20 = vsyncpa [#allocation9], 0 }
   0xb   :  { %22 = vsyncpa [#allocation9 + $0x1], 0  ;;  %s2156_s18 = smov 0   ;;  %s2158_s19 = smov 0  }
   0xc   :  { %s2160_s20 = smov 0   ;;  %s2162_s21 = smov 0  }
   0xd   :  { %s2164_s22 = smov 0   ;;  %s2166_s23 = smov 0  }
   0xe   :  { %s2168_s24 = smov 0   ;;  %s2170_s25 = smov 0  }
   0xf   :  { %s2172_s26 = smov 0   ;;  %s2174_s27 = smov 0  }
  0x10 LB: > { %2546 = sst [smem:[#allocation11_spill]] %s2020_s18  ;;  %s1614_s28 = sadd.s32 4294967295, %s2056_s27   ;;  %s2056_s27 = sphi %s2174_s27, %s28_s27   ;;  %s2052_s26 = sphi %s2172_s26, %s2579_s26   ;;  %s2048_s25 = sphi %s2170_s25, %s2578_s25   ;;  %s2044_s24 = sphi %s2168_s24, %s2577_s24   ;;  %s2040_s23 = sphi %s2166_s23, %s2576_s23   ;;  %s2036_s22 = sphi %s2164_s22, %s2575_s22   ;;  %s2032_s21 = sphi %s2162_s21, %s2574_s21   ;;  %s2028_s20 = sphi %s2160_s20, %s2573_s20   ;;  %s2024_s19 = sphi %s2158_s19, %s2581_s19   ;;  %s2020_s18 = sphi %s2156_s18, %s2580_s18  }
  0x11   : > { %2547 = sst [smem:[#allocation12_spill]] %s2028_s20  ;;  %s1615_s29 = sadd.s32 4294967294, %s2056_s27  }
  0x12   : > { %2548 = sst [smem:[#allocation13_spill]] %s2036_s22  ;;  %s37_s30 = sadd.s32 1, %s2048_s25 }
  0x13   : > { %2549 = sst [smem:[#allocation14_spill]] %s2048_s25  ;;  %s40_s16 = sadd.s32 1, %s2052_s26 }
  0x14   : > { %2550 = sst [smem:[#allocation15_spill]] %s2052_s26  ;;  %p38_p0 = scmp.ge.s32.totalorder %s37_s30, 2 }
  0x15   : > { %s241_s17 = sadd.s32 1, %s2036_s22  ;;  %p248_p1 = scmp.ne.s32.totalorder %s2036_s22, %s2032_s21 }
  0x16   : > { %p249_p2 = scmp.eq.s32.totalorder %s2056_s27, 0  ;;  %s2583_s30 = smov (%p38_p0, %s37_s30), 0 }
  0x17   : > { %2551 = sst [smem:[#allocation16_spill]] %s2583_s30  ;;  %s2585_s16 = smov (!%p38_p0, %s40_s16), %s2052_s26 }
  0x18   : > { %s238_s15 = ssub.s32 %s2048_s25, %s2583_s30  ;;  %p2219_p3 = por %p249_p2, %p248_p1 }
  0x19   : > { %p42_p4 = scmp.ge.s32.totalorder %s2585_s16, 2  ;;  %p239_p5 = scmp.eq.s32.totalorder %s238_s15, 0 }
  0x1a   : > { %s382_s8 = sadd.s32 1, %s2028_s20  ;;  %p392_p6 = scmp.ne.s32.totalorder %s2028_s20, %s2024_s19 }
  0x1b   : > { %s2587_s16 = smov (%p42_p4, %s2585_s16), 0  ;;  %p393_p7 = scmp.eq.s32.totalorder %s1614_s28, 3 }
  0x1c   : > { %2553 = sst [smem:[#allocation17_spill]] %s2587_s16  ;;  %s379_s6 = ssub.s32 %s2052_s26, %s2587_s16 }
  0x1d   : > { %s2229_s7 = scalar_select %p239_p5, %s2036_s22, %s241_s17  }
  0x1e   : > { %p380_p8 = scmp.eq.s32.totalorder %s379_s6, 0  ;;  %p398_p9 = scmp.ne.s32.totalorder %s2024_s19, %s2020_s18 }
  0x1f   : > { %2554 = sst [smem:[#allocation18_spill]] %s2229_s7  ;;  %p2235_p10 = por %p393_p7, %p392_p6 }
  0x20   : > { %p399_p11 = scmp.eq.s32.totalorder %s1615_s29, 3  ;;  %p1617_p13 = scmp.ge.s32.totalorder %s2056_s27, 4 }
  0x21   : > { %s2240_s30 = scalar_select %p380_p8, %s2028_s20, %s382_s8  }
  0x22   : > { %p2242_p12 = por %p399_p11, %p398_p9  ;;  %448 = sbr.rel (%p1617_p13) target bundleno = 51 (0x33), region = 60 }
  0x23   : > { %2556 = sst [smem:[#allocation19_spill]] %s2240_s30 }
  0x24   : > { %s2557_s15 = scalar_select %p2242_p12, 1, 0 }
  0x26   : > { %2558 = sst [smem:[#allocation20_spill]] %s2557_s15 }
  0x27   : > { %458 = sbr.rel (!%p2219_p3) target bundleno = 51 (0x33), region = 68  ;;  %s460_s6 = sand.u32 (%p2219_p3), 1, %s2036_s22  }
  0x28   : > { %s1619_s28 = sshll.u32 (%p2219_p3), %s2048_s25, 2  ;;  %s1618_s17 = sshll.u32 (%p2219_p3), %s460_s6, 4 }
  0x29   : > { %s2559_s9 = sld [smem:[#allocation25_spill]] (%p2219_p3)  ;;  %s462_s29 = scalar_lea.vmem (%p2219_p3), [#allocation7], %s1618_s17 }
  0x2f   : > { %s464_s8 = scalar_lea.vmem %s2559_s9, %s1619_s28 }
  0x30   : > { %v481_v0 = vld [vmem:[%s464_s8] sm:$0xf]  ;;  %v483_v1 = vld [vmem:[%s464_s8 + $0x8] sm:$0xf]  ;;  %v485_v2 = vld [vmem:[%s464_s8 + $0x10] sm:$0xf] }
  0x31   : > { %482 = vst [vmem:[%s462_s29] sm:$0xf] %v481_v0  ;;  %484 = vst [vmem:[%s462_s29 + $0x4] sm:$0xf] %v483_v1  ;;  %v487_v3 = vld [vmem:[%s464_s8 + $0x18] sm:$0xf] }
  0x32   : > { %486 = vst [vmem:[%s462_s29 + $0x8] sm:$0xf] %v485_v2  ;;  %488 = vst [vmem:[%s462_s29 + $0xc] sm:$0xf] %v487_v3 }
  0x33 PF: > { %p1620_p0 = scmp.ge.s32.totalorder %s2056_s27, 1  ;;  %p534_p1 = scmp.lt.s32.totalorder %s2056_s27, 5 }
  0x35   : > { %p535_p2 = pnand %p1620_p0, %p534_p1 }
  0x36   : > { %s541_s12 = sand.u32 (!%p535_p2), 1, %s2032_s21   ;;  %s2532_s26 = sand.u32 (!%p535_p2), 1, %s2024_s19  }
  0x37   : > { %538 = sbr.rel (%p535_p2) target bundleno = 2117 (0x845), region = 117  ;;  %s2560_s13 = sld [smem:[#allocation27_spill]] (!%p535_p2) }
  0x38   : > { %s2561_s14 = sld [smem:[#allocation28_spill]] (!%p535_p2)  ;;  %s2268_s8 = sshll.u32 (!%p535_p2), %s541_s12, 4 }
  0x39   : > { %s2272_s29 = sshll.u32 (!%p535_p2), %s2532_s26, 3  ;;  %p600_p3 = scmp.lt.s32.totalorder (!%p535_p2), %s2044_s24, 1 }
  0x3a   : > { %p604_p4 = scmp.lt.s32.totalorder (!%p535_p2), %s2040_s23, 1  ;;  %s1624_s21 = sshll.u32 (!%p535_p2), %s2040_s23, 4 }
  0x3b   : > { %p608_p5 = scmp.lt.s32.totalorder (!%p535_p2), %s1624_s21, 31  ;;  %s543_s20 = scalar_lea.vmem (!%p535_p2), [#allocation7], %s2268_s8 }
  0x3c   : > { %s601_s9 = scalar_select %p600_p3, %s2044_s24, 1 }
  0x3d   : > { %v2261_v4 = vld [vmem:[%s2560_s13] sm:$0x1]  ;;  %s2279_s25 = scalar_select %p604_p4, %s2040_s23, 1 }
  0x3e   : > { %v2266_v5 = vld [vmem:[%s2561_s14] sm:$0x1]  ;;  %s1623_s16 = sshll.u32 %s601_s9, 3  ;;  %s2589_s21 = smov (!%p608_p5, %s1624_s21), 31 }
  0x3f   : > { %s603_s17 = scalar_lea.vmem %s2511_s0, %s1623_s16  ;;  %s606_s14 = scalar_lea.vmem %s2521_s10, %s2279_s25 }
  0x40   : > { %s1625_s26 = sshll.u32 %s2589_s21, 2  ;;  %s599_s15 = scalar_lea.vmem [#allocation8], %s2272_s29 }
  0x41   : > { %s2291_s30 = scalar_lea.vmem %s2522_s11, %s1625_s26  ;;  %p1626_p6 = scmp.ne.s32.totalorder %s2040_s23, 0 }
  0x42   : > { %s2562_s7 = sld [smem:[#allocation21_spill]] (!%p1626_p6)  ;;  %s2068_s22 = smov (!%p1626_p6), 120  }
  0x43   : > { %619 = sbr.rel (%p1626_p6) target bundleno = 1505 (0x5e1), region = 125  ;;  %s2069_s18 = smov (!%p1626_p6), 112  }
  0x44   : > { %s2563_s6 = sld [smem:[#allocation22_spill]] (!%p1626_p6)  ;;  %s2070_s28 = smov (!%p1626_p6), 104  }
  0x48   : > { %v1912_v6 = vld [vmem:[%s2512_s1 + $0x8] sm:$0xff]   ;;  %v2066_v7 = vmov 0.0   ;;  %v1914_v9 = vld [vmem:[%s2512_s1] sm:$0xff]   ;;  %vm2067_vm0 = vmmov 0   ;;  %vm645_vm1 = vcmask 261120   ;;  %vm816_vm2 = vcmask 60416  }
  0x49   : > { %1712 = vmatprep.subr.bf16.mxu0 %v2066_v7  ;;  %1720 = vmatprep.subr.bf16.mxu1 %v2066_v7  ;;  %v1913_v8 = vld [vmem:[%s2514_s3 + $0x8] sm:$0xff]   ;;  %v1915_v10 = vld [vmem:[%s2514_s3] sm:$0xff]   ;;  %v2354_v45 = vmov 0.0  }
  0x4a   : > { %1713 = vmatpush3.bf16.msra.mxu0 %v1912_v6  ;;  %1716 = vmatprep.mubr.msk.bf16.mxu0 %vm2067_vm0, %v2066_v7  ;;  %v2316_v11 = vld [vmem:[%s603_s17] sm:$0xff]  ;;  %v1916_v13 = vld [vmem:[%s2516_s5 + $0x8] sm:$0xff]   ;;  %s2356_s17 = smov 0  }
  0x4b   : > { %1721 = vmatpush3.bf16.msra.mxu1 %v1913_v8  ;;  %1714 = vmatprep.subr.bf16.mxu0 %v2066_v7  ;;  %v621_v12 = vpack.c.bf16 %v2316_v11, %v2316_v11  ;;  %v1917_v14 = vld [vmem:[%s2516_s5] sm:$0xff]  }
  0x4c   : > { %1722 = vmatprep.subr.bf16.mxu1 %v2066_v7  ;;  %1724 = vmatprep.mubr.msk.bf16.mxu1 %vm2067_vm0, %v2066_v7  ;;  %v1627_v15 = vld [vmem:[%s2513_s2] ss:$0 sm:$0xff] }
  0x4d   : > { %v1631_v16 = vld [vmem:[%s2562_s7] ss:$0 sm:$0xff] }
  0x4e   : > { %1715 = vmatpush3.bf16.msra.mxu0 %v1914_v9  ;;  %v1635_v28 = vld [vmem:[%s2563_s6] ss:$0 sm:$0xff] }
  0x4f   : > { %1723 = vmatpush3.bf16.msra.mxu1 %v1915_v10  ;;  %1728 = vmatprep.subr.bf16.mxu0 %v2066_v7 }
  0x51   : > { %1717 = vmatmul.mubr.msk.bf16.vlgmr.msra.gmra.mxu0 %vm645_vm1, %v621_v12 }
  0x52   : > { %1725 = vmatmul.mubr.msk.bf16.vlgmr.msra.gmra.mxu1 %vm645_vm1, %v621_v12  ;;  %1729 = vmatpush3.bf16.msra.mxu0 %v1916_v13 }
  0x53   : > { %1730 = vmatprep.subr.bf16.mxu0 %v2066_v7  ;;  %1732 = vmatprep.mubr.msk.bf16.mxu0 %vm2067_vm0, %v2066_v7 }
  0x56   : > { %1731 = vmatpush3.bf16.msra.mxu0 %v1917_v14 }
  0x59   : > { %1733 = vmatmul.mubr.msk.bf16.vlgmr.msra.gmra.mxu0 %vm645_vm1, %v621_v12 }
 0x111   : > { %v683_v17 = vpop.f32.mrf.mxu0 }
 0x112   : > { %v684_v18 = vadd.f32 %v1627_v15, %v683_v17  ;;  %v746_v19 = vpop.f32.mrf.mxu1 }
 0x113   : > { %v747_v20 = vadd.f32 %v1631_v16, %v746_v19  ;;  %v1718_v21 = vpop.f32.mrf.mxu0 }
 0x114   : > { %v815_v22 = vpack.c.bf16 %v684_v18, %v684_v18  ;;  %v1726_v23 = vpop.f32.mrf.mxu1 }
 0x115   : > { %v818_v24 = vpack.c.bf16 %v747_v20, %v747_v20  ;;  %v686_v25 = vpop.f32.mrf.mxu0 }
 0x116   : > { %817 = vst.msk [vmem:[#allocation2] sm:$0xf] %vm816_vm2, %v815_v22  ;;  %v749_v26 = vpop.f32.mrf.mxu1  ;;  %825 = vrot.lane.b32.xlu0 %v815_v22, %s2068_s22  ;;  %846 = vrot.lane.b32.xlu1 %v815_v22, %s2069_s18 }
 0x117   : > { %819 = vst.msk [vmem:[#allocation3] sm:$0xf] %vm816_vm2, %v818_v24  ;;  %v1719_v27 = vpop.f32.mrf.mxu0 }
 0x118   : > { %v1727_v29 = vpop.f32.mrf.mxu1 }
 0x119   : > { %v809_v30 = vpop.f32.mrf.mxu0 }
 0x11a   : > { %v810_v31 = vadd.f32 %v1635_v28, %v809_v30  ;;  %833 = vrot.lane.b32.xlu0 %v818_v24, %s2068_s22 }
 0x11b   : > { %v1734_v32 = vpop.f32.mrf.mxu0 }
 0x11c   : > { %v820_v33 = vpack.c.bf16 %v810_v31, %v810_v31 }
 0x11d   : > { %v812_v34 = vpop.f32.mrf.mxu0 }
 0x11e   : > { %821 = vst.msk [vmem:[#allocation4] sm:$0xf] %vm816_vm2, %v820_v33  ;;  %851 = vrot.lane.b32.xlu0 %v818_v24, %s2069_s18  ;;  %841 = vrot.lane.b32.xlu1 %v820_v33, %s2068_s22 }
 0x11f   : > { %v1735_v35 = vpop.f32.mrf.mxu0 }
 0x122   : > { %861 = vrot.lane.b32.xlu0 %v815_v22, %s2070_s28  ;;  %856 = vrot.lane.b32.xlu1 %v820_v33, %s2069_s18 }
 0x126   : > { %871 = vrot.lane.b32.xlu0 %v820_v33, %s2070_s28  ;;  %866 = vrot.lane.b32.xlu1 %v818_v24, %s2070_s28 }
 0x188   : > { %v826_v36 = vpop.permute.xlu0 %825  ;;  %v847_v37 = vpop.permute.xlu1 %846 }
 0x189   : > { %829 = vst.msk [vmem:[#allocation2 + $0x4] sm:$0xf] %vm816_vm2, %v826_v36  ;;  %850 = vst.msk [vmem:[#allocation2 + $0x8] sm:$0xf] %vm816_vm2, %v847_v37 }
 0x18c   : > { %v834_v38 = vpop.permute.xlu0 %833 }
 0x18d   : > { %837 = vst.msk [vmem:[#allocation3 + $0x4] sm:$0xf] %vm816_vm2, %v834_v38 }
 0x190   : > { %v852_v39 = vpop.permute.xlu0 %851  ;;  %v842_v40 = vpop.permute.xlu1 %841 }
 0x191   : > { %855 = vst.msk [vmem:[#allocation3 + $0x8] sm:$0xf] %vm816_vm2, %v852_v39  ;;  %845 = vst.msk [vmem:[#allocation4 + $0x4] sm:$0xf] %vm816_vm2, %v842_v40 }
 0x194   : > { %v862_v41 = vpop.permute.xlu0 %861  ;;  %v857_v42 = vpop.permute.xlu1 %856 }
 0x195   : > { %865 = vst.msk [vmem:[#allocation2 + $0xc] sm:$0xf] %vm816_vm2, %v862_v41  ;;  %860 = vst.msk [vmem:[#allocation4 + $0x8] sm:$0xf] %vm816_vm2, %v857_v42 }
 0x198   : > { %v872_v43 = vpop.permute.xlu0 %871  ;;  %v867_v44 = vpop.permute.xlu1 %866 }
 0x199   : > { %875 = vst.msk [vmem:[#allocation4 + $0xc] sm:$0xf] %vm816_vm2, %v872_v43  ;;  %870 = vst.msk [vmem:[#allocation3 + $0xc] sm:$0xf] %vm816_vm2, %v867_v44 }
 0x19a LB: >> { %v2071_v46 = vmov 0.0   ;;  %s2367_s12 = sshll.u32 %s2064_s17, 3  ;;  %vm900_vm3 = vcmask 64512   ;;  %vm2072_vm4 = vmmov 0   ;;  %vm1020_vm5 = vcmask 1043456   ;;  %s2564_s18 = sld [smem:[#allocation23_spill]]  ;;  %s2064_s17 = sphi %s2356_s17, %s881_s17   ;;  %v2060_v45 = vphi %v2354_v45, %v2565_v45  }
 0x19b   : >> { %1736 = vmatprep.subr.bf16.mxu0 %v2071_v46  ;;  %1742 = vmatprep.subr.bf16.mxu1 %v2071_v46  ;;  %s889_s9 = scalar_lea.vmem [#allocation3], %s2367_s12  ;;  %s885_s13 = scalar_lea.vmem [#allocation2], %s2367_s12 }
 0x19c   : >> { %1738 = vmatprep.mubr.msk.bf16.mxu0 %vm2072_vm4, %v2071_v46  ;;  %1744 = vmatprep.mubr.msk.bf16.mxu1 %vm2072_vm4, %v2071_v46  ;;  %v886_v51 = vld [vmem:[%s885_s13] sm:$0xf]  ;;  %v887_v52 = vld [vmem:[%s885_s13 + $0x4] sm:$0xf]  ;;  %s893_s21 = scalar_lea.vmem [#allocation4], %s2367_s12  ;;  %s881_s17 = sadd.s32 1, %s2064_s17  }
 0x19d   : >> { %p878_p7 = scmp.ge.s32.totalorder %s881_s17, 2  }
 0x19e   : > { %s2566_s28 = sld [smem:[#allocation24_spill]] (%p878_p7)  ;;  %1249 = vst.msk [vmem:[#allocation6] sm:$0xff] (%p878_p7), %vm645_vm1, %v2066_v7 }
 0x1a0   : >> { %v890_v47 = vld [vmem:[%s889_s9] sm:$0xf]  ;;  %v891_v48 = vld [vmem:[%s889_s9 + $0x4] sm:$0xf]  ;;  %s897_s26 = scalar_lea.vmem %s2564_s18, %s2367_s12 }
 0x1a1   : >> { %v905_v49 = vsel %vm900_vm3, %v890_v47, 0  ;;  %v951_v50 = vsel %vm900_vm3, %v891_v48, 0  ;;  %v894_v13 = vld [vmem:[%s893_s21] sm:$0xf]  ;;  %v895_v14 = vld [vmem:[%s893_s21 + $0x4] sm:$0xf] }
 0x1a2   : >> { %1737 = vmatpush3.bf16.xpose.msra.mxu0 %v905_v49  ;;  %1743 = vmatpush3.bf16.xpose.msra.mxu1 %v951_v50  ;;  %v1022_v15 = vsel %vm1020_vm5, %v894_v13, 0  ;;  %v1068_v16 = vsel %vm1020_vm5, %v895_v14, 0  ;;  %v898_v20 = vld [vmem:[%s897_s26] sm:$0xf]  ;;  %v899_v25 = vld [vmem:[%s897_s26 + $0x4] sm:$0xf] }
 0x1a3   : >> { %1748 = vmatprep.subr.bf16.mxu0 %v2071_v46  ;;  %1754 = vmatprep.subr.bf16.mxu1 %v2071_v46  ;;  %v1116_v23 = vsel %vm1020_vm5, %v898_v20, 0  ;;  %v1162_v28 = vsel %vm1020_vm5, %v899_v25, 0 }
 0x1a9   : >> { %1739 = vmatmul.mubr.msk.bf16.vlgmr.msra.gmra.mxu0 %vm900_vm3, %v886_v51  ;;  %1745 = vmatmul.mubr.msk.bf16.vlgmr.msra.gmra.mxu1 %vm900_vm3, %v887_v52  ;;  %v1653_v52 = vld [vmem:[%s2566_s28] ss:$0 sm:$0xff] (%p878_p7) }
 0x1aa   : >> { %1750 = vmatprep.mubr.msk.bf16.mxu0 %vm2072_vm4, %v2071_v46  ;;  %1756 = vmatprep.mubr.msk.bf16.mxu1 %vm2072_vm4, %v2071_v46 }
 0x1ab   : >> { %1749 = vmatpush3.bf16.msra.mxu0 %v1022_v15  ;;  %1755 = vmatpush3.bf16.msra.mxu1 %v1068_v16 }
 0x1ac   : >> { %1760 = vmatprep.subr.bf16.mxu0 %v2071_v46  ;;  %1766 = vmatprep.subr.bf16.mxu1 %v2071_v46 }
 0x269   : >> { %v941_v53 = vpop.f32.mrf.mxu0  ;;  %v987_v54 = vpop.f32.mrf.mxu1 }
 0x26a   : >> { %v993_v55 = vsel %vm900_vm3, %v941_v53, -inf  ;;  %v996_v58 = vsel %vm900_vm3, %v987_v54, -inf }
 0x26b   : >> { %v1746_v56 = vpop.f32.mrf.mxu1  ;;  %994 = vmax.xlane.f32.xlu0 %v993_v55  ;;  %v1740_v57 = vpop.f32.mrf.mxu0 }
 0x26d   : >> { %v944_v59 = vpop.f32.mrf.mxu0  ;;  %v990_v60 = vpop.f32.mrf.mxu1 }
 0x26f   : >> { %v1747_v61 = vpop.f32.mrf.mxu1  ;;  %997 = vmax.xlane.f32.xlu0 %v996_v58  ;;  %v1741_v62 = vpop.f32.mrf.mxu0 }
 0x2f4   : >> { %v995_v63 = vpop.xlane.xlu0 %994 }
 0x2f5   : >> { %v999_v0 = vsub.f32 %v941_v53, %v995_v63 }
 0x2f7   : >> { %v1001_v1 = vmul.f32 1.442695, %v999_v0 }
 0x2f8   : >> { %v998_v2 = vpop.xlane.xlu0 %997 }
 0x2f9   : >> { %1918 = vpow2.f32 %v1001_v1  ;;  %v1000_v3 = vsub.f32 %v987_v54, %v998_v2  ;;  %v1235_v1 = vlaneseq (%p878_p7) }
 0x2fb   : >> { %v1003_v6 = vmul.f32 1.442695, %v1000_v3  ;;  %v1236_v7 = vshrl.u32 (%p878_p7), %v1235_v1, 7 }
 0x2fd   : >> { %1920 = vpow2.f32 %v1003_v6  ;;  %v1237_v2 = vsub.s32 (%p878_p7), 0, %v1236_v7 }
 0x2ff   : > { %v1238_v3 = vrot.slane (%p878_p7), %v2261_v4, %v1237_v2 }
 0x306   : >> { %v1919_v8 = vpop.eup %1918 }
 0x307   : >> { %v1005_v9 = vsel %vm900_vm3, %v1919_v8, 0.0 }
 0x308   : >> { %1006 = vadd.xlane.f32.xlu1 %v1005_v9 }
 0x30a   : >> { %v1921_v10 = vpop.eup %1920 }
 0x30b   : >> { %v1008_v12 = vsel %vm900_vm3, %v1921_v10, 0.0 }
 0x30c   : >> { %1009 = vadd.xlane.f32.xlu1 %v1008_v12 }
 0x391   : >> { %v1007_v17 = vpop.xlane.xlu1 %1006 }
 0x392   : >> { %1922 = vrcp.f32 %v1007_v17 }
 0x395   : >> { %v1010_v18 = vpop.xlane.xlu1 %1009 }
 0x396   : >> { %1924 = vrcp.f32 %v1010_v18 }
 0x39f   : >> { %v1923_v19 = vpop.eup %1922 }
 0x3a0   : >> { %v1013_v21 = vmul.f32 %v1923_v19, %v1919_v8  ;;  %v1245_v8 = vrot.slane (%p878_p7), %v2266_v5, %v1237_v2 }
 0x3a2   : >> { %v1015_v22 = vpack.c.bf16 %v1013_v21, %v1013_v21 }
 0x3a3   : >> { %v1925_v24 = vpop.eup %1924 }
 0x3a4   : >> { %1751 = vmatmul.mubr.msk.bf16.vlgmr.msra.gmra.mxu0 %vm900_vm3, %v1015_v22  ;;  %v1014_v26 = vmul.f32 %v1925_v24, %v1921_v10 }
 0x3a5   : >> { %1761 = vmatpush3.bf16.msra.mxu0 %v1116_v23  ;;  %1762 = vmatprep.mubr.msk.bf16.mxu0 %vm2072_vm4, %v2071_v46 }
 0x3a6   : >> { %v1016_v27 = vpack.c.bf16 %v1014_v26, %v1014_v26 }
 0x3a8   : >> { %1757 = vmatmul.mubr.msk.bf16.vlgmr.msra.gmra.mxu1 %vm900_vm3, %v1016_v27 }
 0x3a9   : >> { %1767 = vmatpush3.bf16.msra.mxu1 %v1162_v28  ;;  %1768 = vmatprep.mubr.msk.bf16.mxu1 %vm2072_vm4, %v2071_v46 }
 0x464   : >> { %v1058_v29 = vpop.f32.mrf.mxu0 }
 0x465   : >> { %v1110_v30 = vpack.c.bf16 %v1058_v29, %v1058_v29 }
 0x466   : >> { %v1752_v31 = vpop.f32.mrf.mxu0 }
 0x467   : >> { %1763 = vmatmul.mubr.msk.bf16.vlgmr.msra.gmra.mxu0 %vm900_vm3, %v1110_v30 }
 0x468   : >> { %v1061_v32 = vpop.f32.mrf.mxu0  ;;  %v1104_v33 = vpop.f32.mrf.mxu1 }
 0x469   : >> { %v1111_v34 = vpack.c.bf16 %v1104_v33, %v1104_v33 }
 0x46a   : >> { %v1753_v35 = vpop.f32.mrf.mxu0  ;;  %v1758_v36 = vpop.f32.mrf.mxu1 }
 0x46b   : >> { %1769 = vmatmul.mubr.msk.bf16.vlgmr.msra.gmra.mxu1 %vm900_vm3, %v1111_v34 }
 0x46c   : >> { %v1107_v37 = vpop.f32.mrf.mxu1 }
 0x46e   : >> { %v1759_v38 = vpop.f32.mrf.mxu1 }
 0x527   : >> { %v1152_v39 = vpop.f32.mrf.mxu0 }
 0x528   : >> { %v1204_v43 = vsel %vm645_vm1, %v1152_v39, 0.0 }
 0x529   : >> { %v1764_v40 = vpop.f32.mrf.mxu0 }
 0x52b   : >> { %v1155_v41 = vpop.f32.mrf.mxu0  ;;  %v1198_v42 = vpop.f32.mrf.mxu1 }
 0x52c   : >> { %v1205_v44 = vsel %vm645_vm1, %v1198_v42, 0.0 }
 0x52d   : >> { %v1206_v46 = vadd.f32 %v1205_v44, %v1204_v43  ;;  %v1765_v47 = vpop.f32.mrf.mxu0  ;;  %v1770_v48 = vpop.f32.mrf.mxu1  ;;  %880 = sbr.rel (!%p878_p7) target bundleno = 410 (0x19a), region = 198 }
 0x52f   : >> { %v1207_v49 = vadd.f32 %v2060_v45, %v1206_v46   ;;  %v1201_v50 = vpop.f32.mrf.mxu1 }
 0x531   : >> { %v1771_v51 = vpop.f32.mrf.mxu1  ;;  %v2565_v45 = vmov %v1207_v49  ;;  %v1215_v53 = vadd.f32 (%p878_p7), %v1653_v52, %v1207_v49 }
 0x533   : > { %v1216_v45 = vadd.f32 %v1215_v53, %v2316_v11 }
 0x535   : > { %v1217_v54 = vsel %vm645_vm1, %v1216_v45, 0.0  ;;  %v1222_v55 = vmul.f32 %v1216_v45, %v1216_v45 }
 0x536   : > { %1218 = vadd.xlane.f32.xlu0 %v1217_v54 }
 0x537   : > { %v1223_v56 = vsel %vm645_vm1, %v1222_v55, 0.0 }
 0x53a   : > { %1224 = vadd.xlane.f32.xlu0 %v1223_v56 }
 0x5bf   : > { %v1219_v57 = vpop.xlane.xlu0 %1218 }
 0x5c0   : > { %v1221_v58 = vmul.f32 0.03125, %v1219_v57 }
 0x5c2   : > { %v1227_v60 = vmul.f32 %v1221_v58, %v1221_v58  ;;  %v1230_v11 = vsub.f32 %v1216_v45, %v1221_v58 }
 0x5c3   : > { %v1225_v59 = vpop.xlane.xlu0 %1224 }
 0x5c4   : > { %v1226_v61 = vmul.f32 0.03125, %v1225_v59 }
 0x5c6   : > { %v1228_v62 = vsub.f32 %v1226_v61, %v1227_v60 }
 0x5c8   : > { %v1229_v63 = vmax.f32 %v1228_v62, 0.0 }
 0x5ca   : > { %v1231_v0 = vadd.f32 1e-05, %v1229_v63 }
 0x5cc   : > { %1926 = vrsqrt.f32 %v1231_v0 }
 0x5d9   : > { %v1927_v6 = vpop.eup %1926 }
 0x5da   : > { %v1233_v9 = vmul.f32 %v1927_v6, %v1230_v11 }
 0x5dc   : > { %v1240_v10 = vmul.f32 %v1238_v3, %v1233_v9 }
 0x5de   : > { %v1247_v12 = vadd.f32 %v1245_v8, %v1240_v10 }
 0x5e0   : > { %1248 = vst.msk [vmem:[#allocation5] sm:$0xff] %vm645_vm1, %v1247_v12 }
 0x5e1 PF: > { %v1928_v13 = vld [vmem:[%s543_s20 + $0x8] sm:$0xff]   ;;  %v2073_v14 = vmov 0.0   ;;  %v1929_v15 = vld [vmem:[%s543_s20] sm:$0xff]   ;;  %vm2074_vm6 = vmmov 0   ;;  %vm1275_vm7 = vcmask 261120   ;;  %p1666_p8 = scmp.ne.s32.totalorder %s2040_s23, 1 }
 0x5e2   : > { %1772 = vmatprep.subr.bf16.mxu0 %v2073_v14  ;;  %1780 = vmatprep.subr.bf16.mxu1 %v2073_v14  ;;  %v1930_v17 = vld [vmem:[%s2291_s30 + $0x38] sm:$0xff]   ;;  %v1931_v19 = vld [vmem:[%s2291_s30 + $0x30] sm:$0xff]   ;;  %v1932_v20 = vld [vmem:[%s2291_s30 + $0x28] sm:$0xff]  }
 0x5e3   : > { %1773 = vmatpush3.bf16.msra.mxu0 %v1928_v13  ;;  %1776 = vmatprep.mubr.msk.bf16.mxu0 %vm2074_vm6, %v2073_v14  ;;  %v1933_v21 = vld [vmem:[%s2291_s30 + $0x20] sm:$0xff]   ;;  %v1934_v22 = vld [vmem:[%s2291_s30 + $0x18] sm:$0xff]   ;;  %v1935_v23 = vld [vmem:[%s2291_s30 + $0x10] sm:$0xff]  }
 0x5e4   : > { %1774 = vmatprep.subr.bf16.mxu0 %v2073_v14  ;;  %1796 = vmatprep.mubr.msk.bf16.mxu1 %vm2074_vm6, %v2073_v14  ;;  %v1936_v24 = vld [vmem:[%s2291_s30 + $0x8] sm:$0xff]   ;;  %v1937_v25 = vld [vmem:[%s2291_s30] sm:$0xff]   ;;  %v1320_v34 = vld [vmem:[#allocation6] sm:$0xff]  ;;  %s2567_s30 = sld [smem:[#allocation26_spill]] (!%p1666_p8) }
 0x5e5   : > { %1781 = vmatpush3.bf16.msra.mxu1 %v1930_v17  ;;  %v1654_v26 = vld [vmem:[%s606_s14] ss:$0 sm:$0xff] }
 0x5e6   : > { %1782 = vmatprep.subr.bf16.mxu1 %v2073_v14 }
 0x5e7   : > { %v1250_v16 = vld [vmem:[#allocation5] sm:$0xff]  ;;  %1775 = vmatpush3.bf16.msra.mxu0 %v1929_v15 }
 0x5e8   : > { %v1251_v18 = vpack.c.bf16 %v1250_v16, %v1250_v16 }
 0x5e9   : > { %1783 = vmatpush3.bf16.msra.mxu1 %v1931_v19 }
 0x5ea   : > { %1777 = vmatmul.mubr.msk.bf16.vlgmr.msra.gmra.mxu0 %vm1275_vm7, %v1251_v18  ;;  %1784 = vmatprep.subr.bf16.mxu1 %v2073_v14 }
 0x5ed   : > { %1785 = vmatpush3.bf16.msra.mxu1 %v1932_v20 }
 0x5ee   : > { %1786 = vmatprep.subr.bf16.mxu1 %v2073_v14 }
 0x5f1   : > { %1787 = vmatpush3.bf16.msra.mxu1 %v1933_v21 }
 0x5f2   : > { %1788 = vmatprep.subr.bf16.mxu1 %v2073_v14 }
 0x5f5   : > { %1789 = vmatpush3.bf16.msra.mxu1 %v1934_v22 }
 0x5f6   : > { %1790 = vmatprep.subr.bf16.mxu1 %v2073_v14 }
 0x5f9   : > { %1791 = vmatpush3.bf16.msra.mxu1 %v1935_v23 }
 0x5fa   : > { %1792 = vmatprep.subr.bf16.mxu1 %v2073_v14 }
 0x5fd   : > { %1793 = vmatpush3.bf16.msra.mxu1 %v1936_v24 }
 0x5fe   : > { %1794 = vmatprep.subr.bf16.mxu1 %v2073_v14 }
 0x601   : > { %1795 = vmatpush3.bf16.msra.mxu1 %v1937_v25 }
 0x6aa   : > { %v1313_v27 = vpop.f32.mrf.mxu0 }
 0x6ab   : > { %v1314_v28 = vadd.f32 %v1654_v26, %v1313_v27 }
 0x6ac   : > { %v1778_v29 = vpop.f32.mrf.mxu0 }
 0x6ad   : > { %v1319_v30 = vmax.f32 %v1314_v28, 0.0 }
 0x6ae   : > { %v1316_v31 = vpop.f32.mrf.mxu0 }
 0x6af   : > { %v1321_v32 = vpack.c.bf16 %v1319_v30, %v1319_v30 }
 0x6b0   : > { %v1779_v33 = vpop.f32.mrf.mxu0 }
 0x6b1   : > { %1797 = vmatmul.mubr.bf16.vlgmr.msra.gmra.mxu1 %v1321_v32 }
 0x771   : > { %v1420_v35 = vpop.f32.mrf.mxu1 }
 0x772   : > { %v1426_v36 = vadd.f32 %v1420_v35, %v1320_v34 }
 0x773   : > { %v1798_v37 = vpop.f32.mrf.mxu1  ;;  %1431 = sbr.rel (%p1666_p8) target bundleno = 2092 (0x82c), region = 136 }
 0x774   : > { %1427 = vst.msk [vmem:[#allocation6] sm:$0xff] %vm1275_vm7, %v1426_v36 }
 0x775   : > { %v1423_v38 = vpop.f32.mrf.mxu1 }
 0x777   : > { %v1799_v39 = vpop.f32.mrf.mxu1 }
 0x778   : > { %v1667_v41 = vld [vmem:[%s2567_s30] ss:$0 sm:$0xff]  ;;  %v1441_v42 = vld [vmem:[#allocation5] sm:$0xff]  ;;  %v1461_v56 = vlaneseq }
 0x77a   : > { %v1462_v57 = vshrl.u32 %v1461_v56, 7 }
 0x77b   : > { %v1432_v40 = vld [vmem:[#allocation6] sm:$0xff] }
 0x77c   : > { %v1440_v43 = vadd.f32 %v1667_v41, %v1432_v40  ;;  %v1463_v58 = vsub.s32 0, %v1462_v57 }
 0x77e   : > { %v1442_v44 = vadd.f32 %v1441_v42, %v1440_v43  ;;  %v1464_v60 = vrot.slane %v2261_v4, %v1463_v58  ;;  %v1471_v62 = vrot.slane %v2266_v5, %v1463_v58 }
 0x780   : > { %v1443_v46 = vsel %vm1275_vm7, %v1442_v44, 0.0  ;;  %v1448_v47 = vmul.f32 %v1442_v44, %v1442_v44 }
 0x781   : > { %1444 = vadd.xlane.f32.xlu0 %v1443_v46 }
 0x782   : > { %v1449_v48 = vsel %vm1275_vm7, %v1448_v47, 0.0 }
 0x785   : > { %1450 = vadd.xlane.f32.xlu0 %v1449_v48 }
 0x80a   : > { %v1445_v49 = vpop.xlane.xlu0 %1444 }
 0x80b   : > { %v1447_v50 = vmul.f32 0.03125, %v1445_v49 }
 0x80d   : > { %v1453_v52 = vmul.f32 %v1447_v50, %v1447_v50  ;;  %v1456_v59 = vsub.f32 %v1442_v44, %v1447_v50 }
 0x80e   : > { %v1451_v51 = vpop.xlane.xlu0 %1450 }
 0x80f   : > { %v1452_v53 = vmul.f32 0.03125, %v1451_v51 }
 0x811   : > { %v1454_v45 = vsub.f32 %v1452_v53, %v1453_v52 }
 0x813   : > { %v1455_v54 = vmax.f32 %v1454_v45, 0.0 }
 0x815   : > { %v1457_v55 = vadd.f32 1e-05, %v1455_v54 }
 0x817   : > { %1938 = vrsqrt.f32 %v1457_v55 }
 0x824   : > { %v1939_v61 = vpop.eup %1938 }
 0x825   : > { %v1459_v63 = vmul.f32 %v1939_v61, %v1456_v59 }
 0x827   : > { %v1466_v0 = vmul.f32 %v1464_v60, %v1459_v63 }
 0x829   : > { %v1473_v1 = vadd.f32 %v1471_v62, %v1466_v0 }
 0x82b   : > { %1474 = vst.msk [vmem:[%s599_s15] sm:$0xff] %vm1275_vm7, %v1473_v1 }
 0x82c PF: > { %s1669_s23 = sshll.u32 %s2044_s24, 7  ;;  %s2568_s9 = sld [smem:[#allocation29_spill]] }
 0x82d   : > { %s1489_s21 = sshll.u32 %s599_s15, 4  ;;  %s2569_s7 = sand.u32 1, %s2024_s19   ;;  %s1490_s21 = int_to_ptr.vmem [resolvable:$true] %s1489_s21 }
 0x82e   : > { %s1476_s22 = scalar_lea.sflag [#allocation9], %s2569_s7  ;;  %s1940_s18 = scalar_lea.vmem %s1490_s21, 128 }
 0x82f   : > { %p1941_p9 = scmp.ne.s32.totalorder %s1490_s21, %s1940_s18  ;;  %s2075_s26 = smov [#allocation8]  }
 0x830   : > { %s1944_s16 = sshll.u32 %s2075_s26, 4  ;;  %s1945_s16 = int_to_ptr.vmem [resolvable:$false] %s1944_s16 }
 0x831   : > { %p1942_p11 = pnand %p1941_p9, %p2235_p10  ;;  %s1946_s6 = scalar_lea.vmem %s1945_s16, 256 }
 0x832   : > { %s1487_s13 = scalar_lea.hbm %s2568_s9, %s1669_s23  ;;  %p1947_p0 = scmp.lt.s32.totalorder %s1490_s21, %s1945_s16 }
 0x833   : > { %p1943_p13 = pneg %p1942_p11  ;;  %p1948_p1 = scmp.lt.s32.totalorder %s1946_s6, %s1940_s18 }
 0x835   : > { %p1949_p2 = por %p1948_p1, %p1947_p0 }
 0x837   : > { %p1950_p3 = pnand %p1949_p2, %p1943_p13 }
 0x839   : > { %1953 = shalt.err (!%p1950_p3)
}
 0x83a   : > { %s1954_s24 = scalar_lea.hbm %s1487_s13, 128  ;;  %s1958_s28 = scalar_lea.hbm %s2568_s9, 256 }
 0x83b   : > { %p1955_p4 = scmp.ne.s32.totalorder %s1487_s13, %s1954_s24  ;;  %p1959_p7 = scmp.lt.s32.totalorder %s1487_s13, %s2568_s9 }
 0x83c   : > { %p1960_p8 = scmp.lt.s32.totalorder %s1958_s28, %s1954_s24 }
 0x83d   : > { %p1956_p5 = pnand %p1955_p4, %p2235_p10 }
 0x83e   : > { %p1961_p9 = por %p1960_p8, %p1959_p7 }
 0x83f   : > { %p1957_p6 = pneg %p1956_p5 }
 0x841   : > { %p1962_p11 = pnand %p1961_p9, %p1957_p6 }
 0x843   : > { %1965 = shalt.err (!%p1962_p11)
}
 0x844   : > { %1800 = dma.vmem_to_hbm [thread:$0]  (%p2235_p10), %s1490_s21, 128, %s1487_s13, %s1476_s22  }
 0x845 PF: > { %s2570_s14 = sld [smem:[#allocation11_spill]]  ;;  %p1806_p13 = scmp.ge.s32.totalorder %s2056_s27, 2 }
 0x847   : > { %p1803_p0 = pnand %p1806_p13, %p2242_p12 }
 0x849   : > { %p1804_p1 = pneg %p1803_p0 }
 0x84b   : > { %s1501_s30 = sand.u32 1, %s2570_s14  }
 0x84c   : > { %s1502_s23 = scalar_lea.sflag [#allocation9], %s1501_s30 }
 0x84d   : > { %2015 = dma.done.wait (%p1804_p1), %s1502_s23, 128  }
 0x84e   : > { %2017 = vsyncadd (%p1804_p1), %s1502_s23, 4294967168  ;;  %s28_s27 = sadd.s32 1, %s2056_s27   ;;  %s2572_s17 = sld [smem:[#allocation12_spill]] }
 0x84f   : > { %p25_p2 = scmp.ge.s32.totalorder %s28_s27, 6   ;;  %s2573_s20 = sld [smem:[#allocation19_spill]] }
 0x850   : > { %s2574_s21 = sld [smem:[#allocation13_spill]]  ;;  %s2580_s18 = smov %s2024_s19 }
 0x851   : > { %s2575_s22 = sld [smem:[#allocation18_spill]]  ;;  %27 = sbr.rel (!%p25_p2) target bundleno = 16 (0x10), region = 209 }
 0x852   : > { %s2576_s23 = sld [smem:[#allocation14_spill]] }
 0x853   : > { %s2577_s24 = sld [smem:[#allocation15_spill]] }
 0x854   : > { %s2578_s25 = sld [smem:[#allocation16_spill]]  ;;  %s2581_s19 = smov %s2572_s17 }
 0x855   : > { %s2579_s26 = sld [smem:[#allocation17_spill]] }
 0x856   :  { %1507 = vsyncpa [#allocation9], 1 }
 0x857   :  { %1509 = vsyncpa [#allocation9 + $0x1], 1 }

// kernel: tpu_custom_call.1
= control target key start
LH: loop header
LB: loop body
LE: loop exit
PB: predicated region body
PF: predicated region fallthrough
CT: control target
= control target key end

     0   :  { %s2511_s0 = inlined_call_operand.vmem [shape: f32[2,8,32], index: 0, kind: input, shape index: {}]   ;;  %s2512_s1 = inlined_call_operand.vmem [shape: bf16[32,32], index: 1, kind: input, shape index: {}]   ;;  %s2513_s2 = inlined_call_operand.vmem [shape: f32[1,32], index: 2, kind: input, shape index: {}]   ;;  %s2514_s3 = inlined_call_operand.vmem [shape: bf16[32,32], index: 3, kind: input, shape index: {}]   ;;  %s2515_s4 = inlined_call_operand.vmem [shape: f32[1,32], index: 4, kind: input, shape index: {}]   ;;  %s2516_s5 = inlined_call_operand.vmem [shape: bf16[32,32], index: 5, kind: input, shape index: {}]   ;;  %s2517_s6 = inlined_call_operand.vmem [shape: f32[1,32], index: 6, kind: input, shape index: {}]   ;;  %s2518_s7 = inlined_call_operand.vmem [shape: bf16[4,8,32], index: 7, kind: input, shape index: {}]   ;;  %s2519_s8 = inlined_call_operand.vmem [shape: f32[1,32], index: 8, kind: input, shape index: {}]   ;;  %s2520_s9 = inlined_call_operand.vmem [shape: bf16[32,256], index: 9, kind: input, shape index: {}]   ;;  %s2521_s10 = inlined_call_operand.vmem [shape: f32[1,256], index: 10, kind: input, shape index: {}]   ;;  %s2522_s11 = inlined_call_operand.vmem [shape: bf16[256,32], index: 11, kind: input, shape index: {}]   ;;  %s2523_s12 = inlined_call_operand.vmem [shape: f32[1,32], index: 12, kind: input, shape index: {}]   ;;  %s2524_s13 = inlined_call_operand.vmem [shape: f32[1,32], index: 13, kind: input, shape index: {}]   ;;  %s2525_s14 = inlined_call_operand.vmem [shape: f32[1,32], index: 14, kind: input, shape index: {}]   ;;  %s2526_s15 = inlined_call_operand.hbm [shape: f32[2,8,32], index: 15, kind: output, shape index: {}]  }
   0x1   :  { %2537 = sst [smem:[#allocation21_spill]] %s2515_s4 }
   0x2   :  { %2538 = sst [smem:[#allocation22_spill]] %s2517_s6 }
   0x3   :  { %2539 = sst [smem:[#allocation23_spill]] %s2518_s7 }
   0x4   :  { %2540 = sst [smem:[#allocation24_spill]] %s2519_s8 }
   0x5   :  { %2541 = sst [smem:[#allocation25_spill]] %s2520_s9 }
   0x6   :  { %2542 = sst [smem:[#allocation26_spill]] %s2523_s12 }
   0x7   :  { %2543 = sst [smem:[#allocation27_spill]] %s2524_s13 }
   0x8   :  { %2544 = sst [smem:[#allocation28_spill]] %s2525_s14 }
   0x9   :  { %2545 = sst [smem:[#allocation29_spill]] %s2526_s15 }
   0xa   :  { %20 = vsyncpa [#allocation9], 0 }
   0xb   :  { %22 = vsyncpa [#allocation9 + $0x1], 0  ;;  %s2156_s18 = smov 0   ;;  %s2158_s19 = smov 0  }
   0xc   :  { %s2160_s20 = smov 0   ;;  %s2162_s21 = smov 0  }
   0xd   :  { %s2164_s22 = smov 0   ;;  %s2166_s23 = smov 0  }
   0xe   :  { %s2168_s24 = smov 0   ;;  %s2170_s25 = smov 0  }
   0xf   :  { %s2172_s26 = smov 0   ;;  %s2174_s27 = smov 0  }
  0x10 LB: > { %2546 = sst [smem:[#allocation11_spill]] %s2020_s18  ;;  %s1614_s28 = sadd.s32 4294967295, %s2056_s27   ;;  %s2056_s27 = sphi %s2174_s27, %s28_s27   ;;  %s2052_s26 = sphi %s2172_s26, %s2579_s26   ;;  %s2048_s25 = sphi %s2170_s25, %s2578_s25   ;;  %s2044_s24 = sphi %s2168_s24, %s2577_s24   ;;  %s2040_s23 = sphi %s2166_s23, %s2576_s23   ;;  %s2036_s22 = sphi %s2164_s22, %s2575_s22   ;;  %s2032_s21 = sphi %s2162_s21, %s2574_s21   ;;  %s2028_s20 = sphi %s2160_s20, %s2573_s20   ;;  %s2024_s19 = sphi %s2158_s19, %s2581_s19   ;;  %s2020_s18 = sphi %s2156_s18, %s2580_s18  }
  0x11   : > { %2547 = sst [smem:[#allocation12_spill]] %s2028_s20  ;;  %s1615_s29 = sadd.s32 4294967294, %s2056_s27  }
  0x12   : > { %2548 = sst [smem:[#allocation13_spill]] %s2036_s22  ;;  %s37_s30 = sadd.s32 1, %s2048_s25 }
  0x13   : > { %2549 = sst [smem:[#allocation14_spill]] %s2048_s25  ;;  %s40_s16 = sadd.s32 1, %s2052_s26 }
  0x14   : > { %2550 = sst [smem:[#allocation15_spill]] %s2052_s26  ;;  %p38_p0 = scmp.ge.s32.totalorder %s37_s30, 2 }
  0x15   : > { %s241_s17 = sadd.s32 1, %s2036_s22  ;;  %p248_p1 = scmp.ne.s32.totalorder %s2036_s22, %s2032_s21 }
  0x16   : > { %p249_p2 = scmp.eq.s32.totalorder %s2056_s27, 0  ;;  %s2583_s30 = smov (%p38_p0, %s37_s30), 0 }
  0x17   : > { %2551 = sst [smem:[#allocation16_spill]] %s2583_s30  ;;  %s2585_s16 = smov (!%p38_p0, %s40_s16), %s2052_s26 }
  0x18   : > { %s238_s15 = ssub.s32 %s2048_s25, %s2583_s30  ;;  %p2219_p3 = por %p249_p2, %p248_p1 }
  0x19   : > { %p42_p4 = scmp.ge.s32.totalorder %s2585_s16, 2  ;;  %p239_p5 = scmp.eq.s32.totalorder %s238_s15, 0 }
  0x1a   : > { %s382_s8 = sadd.s32 1, %s2028_s20  ;;  %p392_p6 = scmp.ne.s32.totalorder %s2028_s20, %s2024_s19 }
  0x1b   : > { %s2587_s16 = smov (%p42_p4, %s2585_s16), 0  ;;  %p393_p7 = scmp.eq.s32.totalorder %s1614_s28, 3 }
  0x1c   : > { %2553 = sst [smem:[#allocation17_spill]] %s2587_s16  ;;  %s379_s6 = ssub.s32 %s2052_s26, %s2587_s16 }
  0x1d   : > { %s2229_s7 = scalar_select %p239_p5, %s2036_s22, %s241_s17  }
  0x1e   : > { %p380_p8 = scmp.eq.s32.totalorder %s379_s6, 0  ;;  %p398_p9 = scmp.ne.s32.totalorder %s2024_s19, %s2020_s18 }
  0x1f   : > { %2554 = sst [smem:[#allocation18_spill]] %s2229_s7  ;;  %p2235_p10 = por %p393_p7, %p392_p6 }
  0x20   : > { %p399_p11 = scmp.eq.s32.totalorder %s1615_s29, 3  ;;  %p1617_p13 = scmp.ge.s32.totalorder %s2056_s27, 4 }
  0x21   : > { %s2240_s30 = scalar_select %p380_p8, %s2028_s20, %s382_s8  }
  0x22   : > { %p2242_p12 = por %p399_p11, %p398_p9  ;;  %448 = sbr.rel (%p1617_p13) target bundleno = 51 (0x33), region = 60 }
  0x23   : > { %2556 = sst [smem:[#allocation19_spill]] %s2240_s30 }
  0x24   : > { %s2557_s15 = scalar_select %p2242_p12, 1, 0 }
  0x26   : > { %2558 = sst [smem:[#allocation20_spill]] %s2557_s15 }
  0x27   : > { %458 = sbr.rel (!%p2219_p3) target bundleno = 51 (0x33), region = 68  ;;  %s460_s6 = sand.u32 (%p2219_p3), 1, %s2036_s22  }
  0x28   : > { %s1619_s28 = sshll.u32 (%p2219_p3), %s2048_s25, 2  ;;  %s1618_s17 = sshll.u32 (%p2219_p3), %s460_s6, 4 }
  0x29   : > { %s2559_s9 = sld [smem:[#allocation25_spill]] (%p2219_p3)  ;;  %s462_s29 = scalar_lea.vmem (%p2219_p3), [#allocation7], %s1618_s17 }
  0x2f   : > { %s464_s8 = scalar_lea.vmem %s2559_s9, %s1619_s28 }
  0x30   : > { %v481_v0 = vld [vmem:[%s464_s8] sm:$0xf]  ;;  %v483_v1 = vld [vmem:[%s464_s8 + $0x8] sm:$0xf]  ;;  %v485_v2 = vld [vmem:[%s464_s8 + $0x10] sm:$0xf] }
  0x31   : > { %482 = vst [vmem:[%s462_s29] sm:$0xf] %v481_v0  ;;  %484 = vst [vmem:[%s462_s29 + $0x4] sm:$0xf] %v483_v1  ;;  %v487_v3 = vld [vmem:[%s464_s8 + $0x18] sm:$0xf] }
  0x32   : > { %486 = vst [vmem:[%s462_s29 + $0x8] sm:$0xf] %v485_v2  ;;  %488 = vst [vmem:[%s462_s29 + $0xc] sm:$0xf] %v487_v3 }
  0x33 PF: > { %p1620_p0 = scmp.ge.s32.totalorder %s2056_s27, 1  ;;  %p534_p1 = scmp.lt.s32.totalorder %s2056_s27, 5 }
  0x35   : > { %p535_p2 = pnand %p1620_p0, %p534_p1 }
  0x36   : > { %s541_s12 = sand.u32 (!%p535_p2), 1, %s2032_s21   ;;  %s2532_s26 = sand.u32 (!%p535_p2), 1, %s2024_s19  }
  0x37   : > { %538 = sbr.rel (%p535_p2) target bundleno = 2117 (0x845), region = 117  ;;  %s2560_s13 = sld [smem:[#allocation27_spill]] (!%p535_p2) }
  0x38   : > { %s2561_s14 = sld [smem:[#allocation28_spill]] (!%p535_p2)  ;;  %s2268_s8 = sshll.u32 (!%p535_p2), %s541_s12, 4 }
  0x39   : > { %s2272_s29 = sshll.u32 (!%p535_p2), %s2532_s26, 3  ;;  %p600_p3 = scmp.lt.s32.totalorder (!%p535_p2), %s2044_s24, 1 }
  0x3a   : > { %p604_p4 = scmp.lt.s32.totalorder (!%p535_p2), %s2040_s23, 1  ;;  %s1624_s21 = sshll.u32 (!%p535_p2), %s2040_s23, 4 }
  0x3b   : > { %p608_p5 = scmp.lt.s32.totalorder (!%p535_p2), %s1624_s21, 31  ;;  %s543_s20 = scalar_lea.vmem (!%p535_p2), [#allocation7], %s2268_s8 }
  0x3c   : > { %s601_s9 = scalar_select %p600_p3, %s2044_s24, 1 }
  0x3d   : > { %v2261_v4 = vld [vmem:[%s2560_s13] sm:$0x1]  ;;  %s2279_s25 = scalar_select %p604_p4, %s2040_s23, 1 }
  0x3e   : > { %v2266_v5 = vld [vmem:[%s2561_s14] sm:$0x1]  ;;  %s1623_s16 = sshll.u32 %s601_s9, 3  ;;  %s2589_s21 = smov (!%p608_p5, %s1624_s21), 31 }
  0x3f   : > { %s603_s17 = scalar_lea.vmem %s2511_s0, %s1623_s16  ;;  %s606_s14 = scalar_lea.vmem %s2521_s10, %s2279_s25 }
  0x40   : > { %s1625_s26 = sshll.u32 %s2589_s21, 2  ;;  %s599_s15 = scalar_lea.vmem [#allocation8], %s2272_s29 }
  0x41   : > { %s2291_s30 = scalar_lea.vmem %s2522_s11, %s1625_s26  ;;  %p1626_p6 = scmp.ne.s32.totalorder %s2040_s23, 0 }
  0x42   : > { %s2562_s7 = sld [smem:[#allocation21_spill]] (!%p1626_p6)  ;;  %s2068_s22 = smov (!%p1626_p6), 120  }
  0x43   : > { %619 = sbr.rel (%p1626_p6) target bundleno = 1505 (0x5e1), region = 125  ;;  %s2069_s18 = smov (!%p1626_p6), 112  }
  0x44   : > { %s2563_s6 = sld [smem:[#allocation22_spill]] (!%p1626_p6)  ;;  %s2070_s28 = smov (!%p1626_p6), 104  }
  0x48   : > { %v1912_v6 = vld [vmem:[%s2512_s1 + $0x8] sm:$0xff]   ;;  %v2066_v7 = vmov 0.0   ;;  %v1914_v9 = vld [vmem:[%s2512_s1] sm:$0xff]   ;;  %vm2067_vm0 = vmmov 0   ;;  %vm645_vm1 = vcmask 261120   ;;  %vm816_vm2 = vcmask 60416  }
  0x49   : > { %1712 = vmatprep.subr.bf16.mxu0 %v2066_v7  ;;  %1720 = vmatprep.subr.bf16.mxu1 %v2066_v7  ;;  %v1913_v8 = vld [vmem:[%s2514_s3 + $0x8] sm:$0xff]   ;;  %v1915_v10 = vld [vmem:[%s2514_s3] sm:$0xff]   ;;  %v2354_v45 = vmov 0.0  }
  0x4a   : > { %1713 = vmatpush3.bf16.msra.mxu0 %v1912_v6  ;;  %1716 = vmatprep.mubr.msk.bf16.mxu0 %vm2067_vm0, %v2066_v7  ;;  %v2316_v11 = vld [vmem:[%s603_s17] sm:$0xff]  ;;  %v1916_v13 = vld [vmem:[%s2516_s5 + $0x8] sm:$0xff]   ;;  %s2356_s17 = smov 0  }
  0x4b   : > { %1721 = vmatpush3.bf16.msra.mxu1 %v1913_v8  ;;  %1714 = vmatprep.subr.bf16.mxu0 %v2066_v7  ;;  %v621_v12 = vpack.c.bf16 %v2316_v11, %v2316_v11  ;;  %v1917_v14 = vld [vmem:[%s2516_s5] sm:$0xff]  }
  0x4c   : > { %1722 = vmatprep.subr.bf16.mxu1 %v2066_v7  ;;  %1724 = vmatprep.mubr.msk.bf16.mxu1 %vm2067_vm0, %v2066_v7  ;;  %v1627_v15 = vld [vmem:[%s2513_s2] ss:$0 sm:$0xff] }
  0x4d   : > { %v1631_v16 = vld [vmem:[%s2562_s7] ss:$0 sm:$0xff] }
  0x4e   : > { %1715 = vmatpush3.bf16.msra.mxu0 %v1914_v9  ;;  %v1635_v28 = vld [vmem:[%s2563_s6] ss:$0 sm:$0xff] }
  0x4f   : > { %1723 = vmatpush3.bf16.msra.mxu1 %v1915_v10  ;;  %1728 = vmatprep.subr.bf16.mxu0 %v2066_v7 }
  0x51   : > { %1717 = vmatmul.mubr.msk.bf16.vlgmr.msra.gmra.mxu0 %vm645_vm1, %v621_v12 }
  0x52   : > { %1725 = vmatmul.mubr.msk.bf16.vlgmr.msra.gmra.mxu1 %vm645_vm1, %v621_v12  ;;  %1729 = vmatpush3.bf16.msra.mxu0 %v1916_v13 }
  0x53   : > { %1730 = vmatprep.subr.bf16.mxu0 %v2066_v7  ;;  %1732 = vmatprep.mubr.msk.bf16.mxu0 %vm2067_vm0, %v2066_v7 }
  0x56   : > { %1731 = vmatpush3.bf16.msra.mxu0 %v1917_v14 }
  0x59   : > { %1733 = vmatmul.mubr.msk.bf16.vlgmr.msra.gmra.mxu0 %vm645_vm1, %v621_v12 }
 0x111   : > { %v683_v17 = vpop.f32.mrf.mxu0 }
 0x112   : > { %v684_v18 = vadd.f32 %v1627_v15, %v683_v17  ;;  %v746_v19 = vpop.f32.mrf.mxu1 }
 0x113   : > { %v747_v20 = vadd.f32 %v1631_v16, %v746_v19  ;;  %v1718_v21 = vpop.f32.mrf.mxu0 }
 0x114   : > { %v815_v22 = vpack.c.bf16 %v684_v18, %v684_v18  ;;  %v1726_v23 = vpop.f32.mrf.mxu1 }
 0x115   : > { %v818_v24 = vpack.c.bf16 %v747_v20, %v747_v20  ;;  %v686_v25 = vpop.f32.mrf.mxu0 }
 0x116   : > { %817 = vst.msk [vmem:[#allocation2] sm:$0xf] %vm816_vm2, %v815_v22  ;;  %v749_v26 = vpop.f32.mrf.mxu1  ;;  %825 = vrot.lane.b32.xlu0 %v815_v22, %s2068_s22  ;;  %846 = vrot.lane.b32.xlu1 %v815_v22, %s2069_s18 }
 0x117   : > { %819 = vst.msk [vmem:[#allocation3] sm:$0xf] %vm816_vm2, %v818_v24  ;;  %v1719_v27 = vpop.f32.mrf.mxu0 }
 0x118   : > { %v1727_v29 = vpop.f32.mrf.mxu1 }
 0x119   : > { %v809_v30 = vpop.f32.mrf.mxu0 }
 0x11a   : > { %v810_v31 = vadd.f32 %v1635_v28, %v809_v30  ;;  %833 = vrot.lane.b32.xlu0 %v818_v24, %s2068_s22 }
 0x11b   : > { %v1734_v32 = vpop.f32.mrf.mxu0 }
 0x11c   : > { %v820_v33 = vpack.c.bf16 %v810_v31, %v810_v31 }
 0x11d   : > { %v812_v34 = vpop.f32.mrf.mxu0 }
 0x11e   : > { %821 = vst.msk [vmem:[#allocation4] sm:$0xf] %vm816_vm2, %v820_v33  ;;  %851 = vrot.lane.b32.xlu0 %v818_v24, %s2069_s18  ;;  %841 = vrot.lane.b32.xlu1 %v820_v33, %s2068_s22 }
 0x11f   : > { %v1735_v35 = vpop.f32.mrf.mxu0 }
 0x122   : > { %861 = vrot.lane.b32.xlu0 %v815_v22, %s2070_s28  ;;  %856 = vrot.lane.b32.xlu1 %v820_v33, %s2069_s18 }
 0x126   : > { %871 = vrot.lane.b32.xlu0 %v820_v33, %s2070_s28  ;;  %866 = vrot.lane.b32.xlu1 %v818_v24, %s2070_s28 }
 0x188   : > { %v826_v36 = vpop.permute.xlu0 %825  ;;  %v847_v37 = vpop.permute.xlu1 %846 }
 0x189   : > { %829 = vst.msk [vmem:[#allocation2 + $0x4] sm:$0xf] %vm816_vm2, %v826_v36  ;;  %850 = vst.msk [vmem:[#allocation2 + $0x8] sm:$0xf] %vm816_vm2, %v847_v37 }
 0x18c   : > { %v834_v38 = vpop.permute.xlu0 %833 }
 0x18d   : > { %837 = vst.msk [vmem:[#allocation3 + $0x4] sm:$0xf] %vm816_vm2, %v834_v38 }
 0x190   : > { %v852_v39 = vpop.permute.xlu0 %851  ;;  %v842_v40 = vpop.permute.xlu1 %841 }
 0x191   : > { %855 = vst.msk [vmem:[#allocation3 + $0x8] sm:$0xf] %vm816_vm2, %v852_v39  ;;  %845 = vst.msk [vmem:[#allocation4 + $0x4] sm:$0xf] %vm816_vm2, %v842_v40 }
 0x194   : > { %v862_v41 = vpop.permute.xlu0 %861  ;;  %v857_v42 = vpop.permute.xlu1 %856 }
 0x195   : > { %865 = vst.msk [vmem:[#allocation2 + $0xc] sm:$0xf] %vm816_vm2, %v862_v41  ;;  %860 = vst.msk [vmem:[#allocation4 + $0x8] sm:$0xf] %vm816_vm2, %v857_v42 }
 0x198   : > { %v872_v43 = vpop.permute.xlu0 %871  ;;  %v867_v44 = vpop.permute.xlu1 %866 }
 0x199   : > { %875 = vst.msk [vmem:[#allocation4 + $0xc] sm:$0xf] %vm816_vm2, %v872_v43  ;;  %870 = vst.msk [vmem:[#allocation3 + $0xc] sm:$0xf] %vm816_vm2, %v867_v44 }
 0x19a LB: >> { %v2071_v46 = vmov 0.0   ;;  %s2367_s12 = sshll.u32 %s2064_s17, 3  ;;  %vm900_vm3 = vcmask 64512   ;;  %vm2072_vm4 = vmmov 0   ;;  %vm1020_vm5 = vcmask 1043456   ;;  %s2564_s18 = sld [smem:[#allocation23_spill]]  ;;  %s2064_s17 = sphi %s2356_s17, %s881_s17   ;;  %v2060_v45 = vphi %v2354_v45, %v2565_v45  }
 0x19b   : >> { %1736 = vmatprep.subr.bf16.mxu0 %v2071_v46  ;;  %1742 = vmatprep.subr.bf16.mxu1 %v2071_v46  ;;  %s889_s9 = scalar_lea.vmem [#allocation3], %s2367_s12  ;;  %s885_s13 = scalar_lea.vmem [#allocation2], %s2367_s12 }
 0x19c   : >> { %1738 = vmatprep.mubr.msk.bf16.mxu0 %vm2072_vm4, %v2071_v46  ;;  %1744 = vmatprep.mubr.msk.bf16.mxu1 %vm2072_vm4, %v2071_v46  ;;  %v886_v51 = vld [vmem:[%s885_s13] sm:$0xf]  ;;  %v887_v52 = vld [vmem:[%s885_s13 + $0x4] sm:$0xf]  ;;  %s893_s21 = scalar_lea.vmem [#allocation4], %s2367_s12  ;;  %s881_s17 = sadd.s32 1, %s2064_s17  }
 0x19d   : >> { %p878_p7 = scmp.ge.s32.totalorder %s881_s17, 2  }
 0x19e   : > { %s2566_s28 = sld [smem:[#allocation24_spill]] (%p878_p7)  ;;  %1249 = vst.msk [vmem:[#allocation6] sm:$0xff] (%p878_p7), %vm645_vm1, %v2066_v7 }
 0x1a0   : >> { %v890_v47 = vld [vmem:[%s889_s9] sm:$0xf]  ;;  %v891_v48 = vld [vmem:[%s889_s9 + $0x4] sm:$0xf]  ;;  %s897_s26 = scalar_lea.vmem %s2564_s18, %s2367_s12 }
 0x1a1   : >> { %v905_v49 = vsel %vm900_vm3, %v890_v47, 0  ;;  %v951_v50 = vsel %vm900_vm3, %v891_v48, 0  ;;  %v894_v13 = vld [vmem:[%s893_s21] sm:$0xf]  ;;  %v895_v14 = vld [vmem:[%s893_s21 + $0x4] sm:$0xf] }
 0x1a2   : >> { %1737 = vmatpush3.bf16.xpose.msra.mxu0 %v905_v49  ;;  %1743 = vmatpush3.bf16.xpose.msra.mxu1 %v951_v50  ;;  %v1022_v15 = vsel %vm1020_vm5, %v894_v13, 0  ;;  %v1068_v16 = vsel %vm1020_vm5, %v895_v14, 0  ;;  %v898_v20 = vld [vmem:[%s897_s26] sm:$0xf]  ;;  %v899_v25 = vld [vmem:[%s897_s26 + $0x4] sm:$0xf] }
 0x1a3   : >> { %1748 = vmatprep.subr.bf16.mxu0 %v2071_v46  ;;  %1754 = vmatprep.subr.bf16.mxu1 %v2071_v46  ;;  %v1116_v23 = vsel %vm1020_vm5, %v898_v20, 0  ;;  %v1162_v28 = vsel %vm1020_vm5, %v899_v25, 0 }
 0x1a9   : >> { %1739 = vmatmul.mubr.msk.bf16.vlgmr.msra.gmra.mxu0 %vm900_vm3, %v886_v51  ;;  %1745 = vmatmul.mubr.msk.bf16.vlgmr.msra.gmra.mxu1 %vm900_vm3, %v887_v52  ;;  %v1653_v52 = vld [vmem:[%s2566_s28] ss:$0 sm:$0xff] (%p878_p7) }
 0x1aa   : >> { %1750 = vmatprep.mubr.msk.bf16.mxu0 %vm2072_vm4, %v2071_v46  ;;  %1756 = vmatprep.mubr.msk.bf16.mxu1 %vm2072_vm4, %v2071_v46 }
 0x1ab   : >> { %1749 = vmatpush3.bf16.msra.mxu0 %v1022_v15  ;;  %1755 = vmatpush3.bf16.msra.mxu1 %v1068_v16 }
 0x1ac   : >> { %1760 = vmatprep.subr.bf16.mxu0 %v2071_v46  ;;  %1766 = vmatprep.subr.bf16.mxu1 %v2071_v46 }
 0x269   : >> { %v941_v53 = vpop.f32.mrf.mxu0  ;;  %v987_v54 = vpop.f32.mrf.mxu1 }
 0x26a   : >> { %v993_v55 = vsel %vm900_vm3, %v941_v53, -inf  ;;  %v996_v58 = vsel %vm900_vm3, %v987_v54, -inf }
 0x26b   : >> { %v1746_v56 = vpop.f32.mrf.mxu1  ;;  %994 = vmax.xlane.f32.xlu0 %v993_v55  ;;  %v1740_v57 = vpop.f32.mrf.mxu0 }
 0x26d   : >> { %v944_v59 = vpop.f32.mrf.mxu0  ;;  %v990_v60 = vpop.f32.mrf.mxu1 }
 0x26f   : >> { %v1747_v61 = vpop.f32.mrf.mxu1  ;;  %997 = vmax.xlane.f32.xlu0 %v996_v58  ;;  %v1741_v62 = vpop.f32.mrf.mxu0 }
 0x2f4   : >> { %v995_v63 = vpop.xlane.xlu0 %994 }
 0x2f5   : >> { %v999_v0 = vsub.f32 %v941_v53, %v995_v63 }
 0x2f7   : >> { %v1001_v1 = vmul.f32 1.442695, %v999_v0 }
 0x2f8   : >> { %v998_v2 = vpop.xlane.xlu0 %997 }
 0x2f9   : >> { %1918 = vpow2.f32 %v1001_v1  ;;  %v1000_v3 = vsub.f32 %v987_v54, %v998_v2  ;;  %v1235_v1 = vlaneseq (%p878_p7) }
 0x2fb   : >> { %v1003_v6 = vmul.f32 1.442695, %v1000_v3  ;;  %v1236_v7 = vshrl.u32 (%p878_p7), %v1235_v1, 7 }
 0x2fd   : >> { %1920 = vpow2.f32 %v1003_v6  ;;  %v1237_v2 = vsub.s32 (%p878_p7), 0, %v1236_v7 }
 0x2ff   : > { %v1238_v3 = vrot.slane (%p878_p7), %v2261_v4, %v1237_v2 }
 0x306   : >> { %v1919_v8 = vpop.eup %1918 }
 0x307   : >> { %v1005_v9 = vsel %vm900_vm3, %v1919_v8, 0.0 }
 0x308   : >> { %1006 = vadd.xlane.f32.xlu1 %v1005_v9 }
 0x30a   : >> { %v1921_v10 = vpop.eup %1920 }
 0x30b   : >> { %v1008_v12 = vsel %vm900_vm3, %v1921_v10, 0.0 }
 0x30c   : >> { %1009 = vadd.xlane.f32.xlu1 %v1008_v12 }
 0x391   : >> { %v1007_v17 = vpop.xlane.xlu1 %1006 }
 0x392   : >> { %1922 = vrcp.f32 %v1007_v17 }
 0x395   : >> { %v1010_v18 = vpop.xlane.xlu1 %1009 }
 0x396   : >> { %1924 = vrcp.f32 %v1010_v18 }
 0x39f   : >> { %v1923_v19 = vpop.eup %1922 }
 0x3a0   : >> { %v1013_v21 = vmul.f32 %v1923_v19, %v1919_v8  ;;  %v1245_v8 = vrot.slane (%p878_p7), %v2266_v5, %v1237_v2 }
 0x3a2   : >> { %v1015_v22 = vpack.c.bf16 %v1013_v21, %v1013_v21 }
 0x3a3   : >> { %v1925_v24 = vpop.eup %1924 }
 0x3a4   : >> { %1751 = vmatmul.mubr.msk.bf16.vlgmr.msra.gmra.mxu0 %vm900_vm3, %v1015_v22  ;;  %v1014_v26 = vmul.f32 %v1925_v24, %v1921_v10 }
 0x3a5   : >> { %1761 = vmatpush3.bf16.msra.mxu0 %v1116_v23  ;;  %1762 = vmatprep.mubr.msk.bf16.mxu0 %vm2072_vm4, %v2071_v46 }
 0x3a6   : >> { %v1016_v27 = vpack.c.bf16 %v1014_v26, %v1014_v26 }
 0x3a8   : >> { %1757 = vmatmul.mubr.msk.bf16.vlgmr.msra.gmra.mxu1 %vm900_vm3, %v1016_v27 }
 0x3a9   : >> { %1767 = vmatpush3.bf16.msra.mxu1 %v1162_v28  ;;  %1768 = vmatprep.mubr.msk.bf16.mxu1 %vm2072_vm4, %v2071_v46 }
 0x464   : >> { %v1058_v29 = vpop.f32.mrf.mxu0 }
 0x465   : >> { %v1110_v30 = vpack.c.bf16 %v1058_v29, %v1058_v29 }
 0x466   : >> { %v1752_v31 = vpop.f32.mrf.mxu0 }
 0x467   : >> { %1763 = vmatmul.mubr.msk.bf16.vlgmr.msra.gmra.mxu0 %vm900_vm3, %v1110_v30 }
 0x468   : >> { %v1061_v32 = vpop.f32.mrf.mxu0  ;;  %v1104_v33 = vpop.f32.mrf.mxu1 }
 0x469   : >> { %v1111_v34 = vpack.c.bf16 %v1104_v33, %v1104_v33 }
 0x46a   : >> { %v1753_v35 = vpop.f32.mrf.mxu0  ;;  %v1758_v36 = vpop.f32.mrf.mxu1 }
 0x46b   : >> { %1769 = vmatmul.mubr.msk.bf16.vlgmr.msra.gmra.mxu1 %vm900_vm3, %v1111_v34 }
 0x46c   : >> { %v1107_v37 = vpop.f32.mrf.mxu1 }
 0x46e   : >> { %v1759_v38 = vpop.f32.mrf.mxu1 }
 0x527   : >> { %v1152_v39 = vpop.f32.mrf.mxu0 }
 0x528   : >> { %v1204_v43 = vsel %vm645_vm1, %v1152_v39, 0.0 }
 0x529   : >> { %v1764_v40 = vpop.f32.mrf.mxu0 }
 0x52b   : >> { %v1155_v41 = vpop.f32.mrf.mxu0  ;;  %v1198_v42 = vpop.f32.mrf.mxu1 }
 0x52c   : >> { %v1205_v44 = vsel %vm645_vm1, %v1198_v42, 0.0 }
 0x52d   : >> { %v1206_v46 = vadd.f32 %v1205_v44, %v1204_v43  ;;  %v1765_v47 = vpop.f32.mrf.mxu0  ;;  %v1770_v48 = vpop.f32.mrf.mxu1  ;;  %880 = sbr.rel (!%p878_p7) target bundleno = 410 (0x19a), region = 198 }
 0x52f   : >> { %v1207_v49 = vadd.f32 %v2060_v45, %v1206_v46   ;;  %v1201_v50 = vpop.f32.mrf.mxu1 }
 0x531   : >> { %v1771_v51 = vpop.f32.mrf.mxu1  ;;  %v2565_v45 = vmov %v1207_v49  ;;  %v1215_v53 = vadd.f32 (%p878_p7), %v1653_v52, %v1207_v49 }
 0x533   : > { %v1216_v45 = vadd.f32 %v1215_v53, %v2316_v11 }
 0x535   : > { %v1217_v54 = vsel %vm645_vm1, %v1216_v45, 0.0  ;;  %v1222_v55 = vmul.f32 %v1216_v45, %v1216_v45 }
 0x536   : > { %1218 = vadd.xlane.f32.xlu0 %v1217_v54 }
 0x537   : > { %v1223_v56 = vsel %vm645_vm1, %v1222_v55, 0.0 }
 0x53a   : > { %1224 = vadd.xlane.f32.xlu0 %v1223_v56 }
 0x5bf   : > { %v1219_v57 = vpop.xlane.xlu0 %1218 }
 0x5c0   : > { %v1221_v58 = vmul.f32 0.03125, %v1219_v57 }
 0x5c2   : > { %v1227_v60 = vmul.f32 %v1221_v58, %v1221_v58  ;;  %v1230_v11 = vsub.f32 %v1216_v45, %v1221_v58 }
 0x5c3   : > { %v1225_v59 = vpop.xlane.xlu0 %1224 }
 0x5c4   : > { %v1226_v61 = vmul.f32 0.03125, %v1225_v59 }
 0x5c6   : > { %v1228_v62 = vsub.f32 %v1226_v61, %v1227_v60 }
 0x5c8   : > { %v1229_v63 = vmax.f32 %v1228_v62, 0.0 }
 0x5ca   : > { %v1231_v0 = vadd.f32 1e-05, %v1229_v63 }
 0x5cc   : > { %1926 = vrsqrt.f32 %v1231_v0 }
 0x5d9   : > { %v1927_v6 = vpop.eup %1926 }
 0x5da   : > { %v1233_v9 = vmul.f32 %v1927_v6, %v1230_v11 }
 0x5dc   : > { %v1240_v10 = vmul.f32 %v1238_v3, %v1233_v9 }
 0x5de   : > { %v1247_v12 = vadd.f32 %v1245_v8, %v1240_v10 }
 0x5e0   : > { %1248 = vst.msk [vmem:[#allocation5] sm:$0xff] %vm645_vm1, %v1247_v12 }
 0x5e1 PF: > { %v1928_v13 = vld [vmem:[%s543_s20 + $0x8] sm:$0xff]   ;;  %v2073_v14 = vmov 0.0   ;;  %v1929_v15 = vld [vmem:[%s543_s20] sm:$0xff]   ;;  %vm2074_vm6 = vmmov 0   ;;  %vm1275_vm7 = vcmask 261120   ;;  %p1666_p8 = scmp.ne.s32.totalorder %s2040_s23, 1 }
 0x5e2   : > { %1772 = vmatprep.subr.bf16.mxu0 %v2073_v14  ;;  %1780 = vmatprep.subr.bf16.mxu1 %v2073_v14  ;;  %v1930_v17 = vld [vmem:[%s2291_s30 + $0x38] sm:$0xff]   ;;  %v1931_v19 = vld [vmem:[%s2291_s30 + $0x30] sm:$0xff]   ;;  %v1932_v20 = vld [vmem:[%s2291_s30 + $0x28] sm:$0xff]  }
 0x5e3   : > { %1773 = vmatpush3.bf16.msra.mxu0 %v1928_v13  ;;  %1776 = vmatprep.mubr.msk.bf16.mxu0 %vm2074_vm6, %v2073_v14  ;;  %v1933_v21 = vld [vmem:[%s2291_s30 + $0x20] sm:$0xff]   ;;  %v1934_v22 = vld [vmem:[%s2291_s30 + $0x18] sm:$0xff]   ;;  %v1935_v23 = vld [vmem:[%s2291_s30 + $0x10] sm:$0xff]  }
 0x5e4   : > { %1774 = vmatprep.subr.bf16.mxu0 %v2073_v14  ;;  %1796 = vmatprep.mubr.msk.bf16.mxu1 %vm2074_vm6, %v2073_v14  ;;  %v1936_v24 = vld [vmem:[%s2291_s30 + $0x8] sm:$0xff]   ;;  %v1937_v25 = vld [vmem:[%s2291_s30] sm:$0xff]   ;;  %v1320_v34 = vld [vmem:[#allocation6] sm:$0xff]  ;;  %s2567_s30 = sld [smem:[#allocation26_spill]] (!%p1666_p8) }
 0x5e5   : > { %1781 = vmatpush3.bf16.msra.mxu1 %v1930_v17  ;;  %v1654_v26 = vld [vmem:[%s606_s14] ss:$0 sm:$0xff] }
 0x5e6   : > { %1782 = vmatprep.subr.bf16.mxu1 %v2073_v14 }
 0x5e7   : > { %v1250_v16 = vld [vmem:[#allocation5] sm:$0xff]  ;;  %1775 = vmatpush3.bf16.msra.mxu0 %v1929_v15 }
 0x5e8   : > { %v1251_v18 = vpack.c.bf16 %v1250_v16, %v1250_v16 }
 0x5e9   : > { %1783 = vmatpush3.bf16.msra.mxu1 %v1931_v19 }
 0x5ea   : > { %1777 = vmatmul.mubr.msk.bf16.vlgmr.msra.gmra.mxu0 %vm1275_vm7, %v1251_v18  ;;  %1784 = vmatprep.subr.bf16.mxu1 %v2073_v14 }
 0x5ed   : > { %1785 = vmatpush3.bf16.msra.mxu1 %v1932_v20 }
 0x5ee   : > { %1786 = vmatprep.subr.bf16.mxu1 %v2073_v14 }
 0x5f1   : > { %1787 = vmatpush3.bf16.msra.mxu1 %v1933_v21 }
 0x5f2   : > { %1788 = vmatprep.subr.bf16.mxu1 %v2073_v14 }
 0x5f5   : > { %1789 = vmatpush3.bf16.msra.mxu1 %v1934_v22 }
 0x5f6   : > { %1790 = vmatprep.subr.bf16.mxu1 %v2073_v14 }
 0x5f9   : > { %1791 = vmatpush3.bf16.msra.mxu1 %v1935_v23 }
 0x5fa   : > { %1792 = vmatprep.subr.bf16.mxu1 %v2073_v14 }
 0x5fd   : > { %1793 = vmatpush3.bf16.msra.mxu1 %v1936_v24 }
 0x5fe   : > { %1794 = vmatprep.subr.bf16.mxu1 %v2073_v14 }
 0x601   : > { %1795 = vmatpush3.bf16.msra.mxu1 %v1937_v25 }
 0x6aa   : > { %v1313_v27 = vpop.f32.mrf.mxu0 }
 0x6ab   : > { %v1314_v28 = vadd.f32 %v1654_v26, %v1313_v27 }
 0x6ac   : > { %v1778_v29 = vpop.f32.mrf.mxu0 }
 0x6ad   : > { %v1319_v30 = vmax.f32 %v1314_v28, 0.0 }
 0x6ae   : > { %v1316_v31 = vpop.f32.mrf.mxu0 }
 0x6af   : > { %v1321_v32 = vpack.c.bf16 %v1319_v30, %v1319_v30 }
 0x6b0   : > { %v1779_v33 = vpop.f32.mrf.mxu0 }
 0x6b1   : > { %1797 = vmatmul.mubr.bf16.vlgmr.msra.gmra.mxu1 %v1321_v32 }
 0x771   : > { %v1420_v35 = vpop.f32.mrf.mxu1 }
 0x772   : > { %v1426_v36 = vadd.f32 %v1420_v35, %v1320_v34 }
 0x773   : > { %v1798_v37 = vpop.f32.mrf.mxu1  ;;  %1431 = sbr.rel (%p1666_p8) target bundleno = 2092 (0x82c), region = 136 }
 0x774   : > { %1427 = vst.msk [vmem:[#allocation6] sm:$0xff] %vm1275_vm7, %v1426_v36 }
 0x775   : > { %v1423_v38 = vpop.f32.mrf.mxu1 }
 0x777   : > { %v1799_v39 = vpop.f32.mrf.mxu1 }
 0x778   : > { %v1667_v41 = vld [vmem:[%s2567_s30] ss:$0 sm:$0xff]  ;;  %v1441_v42 = vld [vmem:[#allocation5] sm:$0xff]  ;;  %v1461_v56 = vlaneseq }
 0x77a   : > { %v1462_v57 = vshrl.u32 %v1461_v56, 7 }
 0x77b   : > { %v1432_v40 = vld [vmem:[#allocation6] sm:$0xff] }
 0x77c   : > { %v1440_v43 = vadd.f32 %v1667_v41, %v1432_v40  ;;  %v1463_v58 = vsub.s32 0, %v1462_v57 }
 0x77e   : > { %v1442_v44 = vadd.f32 %v1441_v42, %v1440_v43  ;;  %v1464_v60 = vrot.slane %v2261_v4, %v1463_v58  ;;  %v1471_v62 = vrot.slane %v2266_v5, %v1463_v58 }
 0x780   : > { %v1443_v46 = vsel %vm1275_vm7, %v1442_v44, 0.0  ;;  %v1448_v47 = vmul.f32 %v1442_v44, %v1442_v44 }
 0x781   : > { %1444 = vadd.xlane.f32.xlu0 %v1443_v46 }
 0x782   : > { %v1449_v48 = vsel %vm1275_vm7, %v1448_v47, 0.0 }
 0x785   : > { %1450 = vadd.xlane.f32.xlu0 %v1449_v48 }
 0x80a   : > { %v1445_v49 = vpop.xlane.xlu0 %1444 }
 0x80b   : > { %v1447_v50 = vmul.f32 0.03125, %v1445_v49 }
 0x80d   : > { %v1453_v52 = vmul.f32 %v1447_v50, %v1447_v50  ;;  %v1456_v59 = vsub.f32 %v1442_v44, %v1447_v50 }
 0x80e   : > { %v1451_v51 = vpop.xlane.xlu0 %1450 }
 0x80f   : > { %v1452_v53 = vmul.f32 0.03125, %v1451_v51 }
 0x811   : > { %v1454_v45 = vsub.f32 %v1452_v53, %v1453_v52 }
 0x813   : > { %v1455_v54 = vmax.f32 %v1454_v45, 0.0 }
 0x815   : > { %v1457_v55 = vadd.f32 1e-05, %v1455_v54 }
 0x817   : > { %1938 = vrsqrt.f32 %v1457_v55 }
 0x824   : > { %v1939_v61 = vpop.eup %1938 }
 0x825   : > { %v1459_v63 = vmul.f32 %v1939_v61, %v1456_v59 }
 0x827   : > { %v1466_v0 = vmul.f32 %v1464_v60, %v1459_v63 }
 0x829   : > { %v1473_v1 = vadd.f32 %v1471_v62, %v1466_v0 }
 0x82b   : > { %1474 = vst.msk [vmem:[%s599_s15] sm:$0xff] %vm1275_vm7, %v1473_v1 }
 0x82c PF: > { %s1669_s23 = sshll.u32 %s2044_s24, 7  ;;  %s2568_s9 = sld [smem:[#allocation29_spill]] }
 0x82d   : > { %s1489_s21 = sshll.u32 %s599_s15, 4  ;;  %s2569_s7 = sand.u32 1, %s2024_s19   ;;  %s1490_s21 = int_to_ptr.vmem [resolvable:$true] %s1489_s21 }
 0x82e   : > { %s1476_s22 = scalar_lea.sflag [#allocation9], %s2569_s7  ;;  %s1940_s18 = scalar_lea.vmem %s1490_s21, 128 }
 0x82f   : > { %p1941_p9 = scmp.ne.s32.totalorder %s1490_s21, %s1940_s18  ;;  %s2075_s26 = smov [#allocation8]  }
 0x830   : > { %s1944_s16 = sshll.u32 %s2075_s26, 4  ;;  %s1945_s16 = int_to_ptr.vmem [resolvable:$false] %s1944_s16 }
 0x831   : > { %p1942_p11 = pnand %p1941_p9, %p2235_p10  ;;  %s1946_s6 = scalar_lea.vmem %s1945_s16, 256 }
 0x832   : > { %s1487_s13 = scalar_lea.hbm %s2568_s9, %s1669_s23  ;;  %p1947_p0 = scmp.lt.s32.totalorder %s1490_s21, %s1945_s16 }
 0x833   : > { %p1943_p13 = pneg %p1942_p11  ;;  %p1948_p1 = scmp.lt.s32.totalorder %s1946_s6, %s1940_s18 }
 0x835   : > { %p1949_p2 = por %p1948_p1, %p1947_p0 }
 0x837   : > { %p1950_p3 = pnand %p1949_p2, %p1943_p13 }
 0x839   : > { %1953 = shalt.err (!%p1950_p3)
}
 0x83a   : > { %s1954_s24 = scalar_lea.hbm %s1487_s13, 128  ;;  %s1958_s28 = scalar_lea.hbm %s2568_s9, 256 }
 0x83b   : > { %p1955_p4 = scmp.ne.s32.totalorder %s1487_s13, %s1954_s24  ;;  %p1959_p7 = scmp.lt.s32.totalorder %s1487_s13, %s2568_s9 }
 0x83c   : > { %p1960_p8 = scmp.lt.s32.totalorder %s1958_s28, %s1954_s24 }
 0x83d   : > { %p1956_p5 = pnand %p1955_p4, %p2235_p10 }
 0x83e   : > { %p1961_p9 = por %p1960_p8, %p1959_p7 }
 0x83f   : > { %p1957_p6 = pneg %p1956_p5 }
 0x841   : > { %p1962_p11 = pnand %p1961_p9, %p1957_p6 }
 0x843   : > { %1965 = shalt.err (!%p1962_p11)
}
 0x844   : > { %1800 = dma.vmem_to_hbm [thread:$0]  (%p2235_p10), %s1490_s21, 128, %s1487_s13, %s1476_s22  }
 0x845 PF: > { %s2570_s14 = sld [smem:[#allocation11_spill]]  ;;  %p1806_p13 = scmp.ge.s32.totalorder %s2056_s27, 2 }
 0x847   : > { %p1803_p0 = pnand %p1806_p13, %p2242_p12 }
 0x849   : > { %p1804_p1 = pneg %p1803_p0 }
 0x84b   : > { %s1501_s30 = sand.u32 1, %s2570_s14  }
 0x84c   : > { %s1502_s23 = scalar_lea.sflag [#allocation9], %s1501_s30 }
 0x84d   : > { %2015 = dma.done.wait (%p1804_p1), %s1502_s23, 128  }
 0x84e   : > { %2017 = vsyncadd (%p1804_p1), %s1502_s23, 4294967168  ;;  %s28_s27 = sadd.s32 1, %s2056_s27   ;;  %s2572_s17 = sld [smem:[#allocation12_spill]] }
 0x84f   : > { %p25_p2 = scmp.ge.s32.totalorder %s28_s27, 6   ;;  %s2573_s20 = sld [smem:[#allocation19_spill]] }
 0x850   : > { %s2574_s21 = sld [smem:[#allocation13_spill]]  ;;  %s2580_s18 = smov %s2024_s19 }
 0x851   : > { %s2575_s22 = sld [smem:[#allocation18_spill]]  ;;  %27 = sbr.rel (!%p25_p2) target bundleno = 16 (0x10), region = 209 }
 0x852   : > { %s2576_s23 = sld [smem:[#allocation14_spill]] }
 0x853   : > { %s2577_s24 = sld [smem:[#allocation15_spill]] }
 0x854   : > { %s2578_s25 = sld [smem:[#allocation16_spill]]  ;;  %s2581_s19 = smov %s2572_s17 }
 0x855   : > { %s2579_s26 = sld [smem:[#allocation17_spill]] }
 0x856   :  { %1507 = vsyncpa [#allocation9], 1 }
 0x857   :  { %1509 = vsyncpa [#allocation9 + $0x1], 1 }

</bundles_post_ra>
